<compile_context>
chip_gen: v5e
topology: v5e:2x2
jax: 0.10.0
libtpu: 0.0.40
codegen_flags: <defaults>
</compile_context>

<pallas_src>
import math

import jax
import jax.numpy as jnp
from jax import lax
from jax.experimental import pallas as pl
from jax.experimental.pallas import tpu as pltpu


# ----------------------------------------------------------------------------
# Kernels
# ----------------------------------------------------------------------------
def _make_conv_bn_relu_pool_kernel(bb, H, W):
    """Fused conv(3x3, valid) + BN/ReLU + maxpool(3,2,1) + global-avg epilogue.

    Grid = (Cmid//tn, B//bb, Cin//tk); the Cin axis (last, "arbitrary") accumulates
    the 9 shifted-tap matmuls into a per-(n, nb) VMEM f32 scratch of shape
    (bb*H*W, tn).  On the last Cin step the folded BN scale/shift + ReLU + pooling
    are applied and only the pooled (bb, tn) rows are written to HBM.
    """
    Ho, Wo = H - 2, W - 2                      # valid conv, k=3, stride=1
    Hp = (Ho + 2 - 3) // 2 + 1                 # maxpool(3, stride=2, pad=1) output
    Wp = (Wo + 2 - 3) // 2 + 1
    M = bb * H * W                             # MXU M dim: bb packed images

    def kernel(x_ref, w_ref, scale_ref, shift_ref, o_ref, acc_ref):
        k = pl.program_id(2)

        @pl.when(k == 0)
        def _init():
            acc_ref[...] = jnp.zeros_like(acc_ref)

        x = x_ref[...]                          # (bb*H*W, tk) bf16, all bb images
        for dh in range(3):
            for dw in range(3):
                tap = dh * 3 + dw
                off = dh * W + dw               # flat shift for this tap
                y = jnp.dot(x, w_ref[tap],
                            preferred_element_type=jnp.float32)   # (M, tn) f32
                # One contiguous slab add per tap.  acc row b*H*W + r*W + c holds
                # the conv output at (image b, row r, col c); columns c >= Wo and
                # rows r >= Ho are junk that the epilogue never reads, so the
                # <= 2W+2-row tail clipping / cross-image bleed is harmless.
                if off == 0:
                    acc_ref[...] += y
                else:
                    acc_ref[0:M - off, :] += y[off:, :]

        @pl.when(k == pl.num_programs(2) - 1)
        def _finalize():
            # folded conv-bias + eval-mode BatchNorm, then ReLU (whole slab; junk
            # lanes computed too but never read below)
            yact = jnp.maximum(acc_ref[...] * scale_ref[...] + shift_ref[...], 0.0)
            # MaxPool2d(3, stride=2, padding=1): clipped windows == -inf padding.
            # adaptive_avg_pool2d((1,1)) == mean of the window maxima.
            # Runs once per (n, nb) cell, so keep it simple: per-row column-window
            # maxima (shared across overlapping row windows), then row maxima.
            inv = 1.0 / float(Hp * Wp)
            for b in range(bb):
                base = b * H * W
                colmax = []                     # colmax[r][j]: (1, tn)
                for r in range(Ho):
                    row = []
                    for j in range(Wp):
                        c0, c1 = max(0, 2 * j - 1), min(Wo, 2 * j + 2)
                        row.append(jnp.max(
                            yact[base + r * W + c0: base + r * W + c1, :],
                            axis=0, keepdims=True))
                    colmax.append(row)
                total = None
                for i in range(Hp):
                    r0, r1 = max(0, 2 * i - 1), min(Ho, 2 * i + 2)
                    for j in range(Wp):
                        wmax = colmax[r0][j]
                        for r in range(r0 + 1, r1):
                            wmax = jnp.maximum(wmax, colmax[r][j])
                        total = wmax if total is None else total + wmax
                o_ref[b:b + 1, :] = total * inv

    return kernel


def _fc_kernel(x_ref, w1_ref, b1_ref, w2_ref, b2_ref, o_ref):
    """Fused Linear -> ReLU -> Linear (fc_loc), bf16 matmuls, f32 accumulation."""
    h = jnp.dot(x_ref[...], w1_ref[...],
                preferred_element_type=jnp.float32) + b1_ref[...]
    h = jnp.maximum(h, 0.0).astype(w2_ref.dtype)
    o_ref[...] = jnp.dot(h, w2_ref[...],
                         preferred_element_type=jnp.float32) + b2_ref[...]


# ----------------------------------------------------------------------------
# Wrapper
# ----------------------------------------------------------------------------
def patch_generator_forward(x_nchw, params, *, bb=None, tn=None, tk=None,
                            weight_buffers=2, vmem_limit_bytes=None):
    w_conv = params["w_conv"]                          # (3, 3, Cin, Cmid)  (HWIO)
    Cin, Cmid = w_conv.shape[2], w_conv.shape[3]
    B, C, H, W = x_nchw.shape
    assert C == Cin and H >= 3 and W >= 3

    # Batch packing: by default the whole batch goes into the MXU M dimension so
    # the conv weights stream exactly once.  Production sizing: pick bb/tk/tn so
    # 2x(9*tk*tn*2B weights) + 2x(bb*H*W*tk*2B activations) + bb*H*W*tn*4B
    # accumulator fits the per-generation VMEM (e.g. tk=tn=512 on v7x, 1024 on
    # v5e/v6e at Cin=2048/Cmid=4096).
    if bb is None:
        bb = B
    assert B % bb == 0
    assert bb == B or bb % 8 == 0, "sub-batch blocks need 8-aligned row counts"

    if tn is None:
        tn = 128 if Cmid % 128 == 0 else Cmid
    if tk is None:
        tk = 128 if Cin % 128 == 0 else Cin
    assert Cmid % tn == 0 and Cin % tk == 0

    if vmem_limit_bytes is None:
        # Leave headroom over physical VMEM (v7x only has 64 MiB per TensorCore).
        try:
            vmem_limit_bytes = (pltpu.get_tpu_info().vmem_capacity_bytes * 3) // 4
        except Exception:
            vmem_limit_bytes = 48 * 1024 * 1024

    # channels-last, fully flattened over (batch, spatial), bf16 for the MXU
    x = jnp.transpose(x_nchw, (0, 2, 3, 1)).reshape(B * H * W, Cin).astype(jnp.bfloat16)
    w = w_conv.reshape(9, Cin, Cmid).astype(jnp.bfloat16)

    # Fold conv bias + eval-mode BatchNorm into per-channel scale/shift (f32).
    eps = 1e-5
    scale = (params["bn_gamma"] / jnp.sqrt(params["bn_var"] + eps)).astype(jnp.float32)
    shift = (params["bn_beta"] + (params["b_conv"] - params["bn_mean"]) * scale
             ).astype(jnp.float32)
    scale2 = scale.reshape(1, Cmid)
    shift2 = shift.reshape(1, Cmid)

    w_spec_kwargs = {}
    if weight_buffers is not None and weight_buffers > 2:
        # Deeper weight pipelining if the weight DMA is still exposed (optional).
        w_spec_kwargs["pipeline_mode"] = pl.Buffered(weight_buffers)

    pooled = pl.pallas_call(
        _make_conv_bn_relu_pool_kernel(bb, H, W),
        out_shape=jax.ShapeDtypeStruct((B, Cmid), jnp.float32),
        # Cmid axis leads ("parallel") so megacore still shards when B//bb == 1;
        # the Cin reduction axis stays last ("arbitrary").
        grid=(Cmid // tn, B // bb, Cin // tk),
        in_specs=[
            pl.BlockSpec((bb * H * W, tk), lambda n, nb, k: (nb, k)),
            pl.BlockSpec((9, tk, tn), lambda n, nb, k: (0, k, n), **w_spec_kwargs),
            pl.BlockSpec((1, tn), lambda n, nb, k: (0, n)),
            pl.BlockSpec((1, tn), lambda n, nb, k: (0, n)),
        ],
        out_specs=pl.BlockSpec((bb, tn), lambda n, nb, k: (nb, n)),
        scratch_shapes=[pltpu.VMEM((bb * H * W, tn), jnp.float32)],
        compiler_params=pltpu.CompilerParams(
            dimension_semantics=("parallel", "parallel", "arbitrary"),
            vmem_limit_bytes=int(vmem_limit_bytes)),
    )(x, w, scale2, shift2)

    # fc_loc: Linear(Cmid, hidden) -> ReLU -> Linear(hidden, 18)
    w1 = params["w_fc1"].astype(jnp.bfloat16)
    b1 = params["b_fc1"].reshape(1, -1).astype(jnp.float32)
    hidden = w1.shape[1]
    w2 = params["w_fc2"]
    b2 = params["b_fc2"]
    n_out = w2.shape[1]                                 # 18
    NPAD = 128                                          # lane-dense output stores
    w2p = jnp.zeros((hidden, NPAD), jnp.float32).at[:, :n_out].set(w2).astype(jnp.bfloat16)
    b2p = jnp.zeros((1, NPAD), jnp.float32).at[:, :n_out].set(b2.reshape(1, -1))

    theta_pad = pl.pallas_call(
        _fc_kernel,
        out_shape=jax.ShapeDtypeStruct((B, NPAD), jnp.float32),
        grid=(1,),
        in_specs=[pl.BlockSpec((B, Cmid), lambda i: (0, 0)),
                  pl.BlockSpec((Cmid, hidden), lambda i: (0, 0)),
                  pl.BlockSpec((1, hidden), lambda i: (0, 0)),
                  pl.BlockSpec((hidden, NPAD), lambda i: (0, 0)),
                  pl.BlockSpec((1, NPAD), lambda i: (0, 0))],
        out_specs=pl.BlockSpec((B, NPAD), lambda i: (0, 0)),
    )(pooled.astype(jnp.bfloat16), w1, b1, w2p, b2p)

    theta = theta_pad[:, :n_out]
    return theta.reshape(-1, 3, 2, 3), pooled


# ----------------------------------------------------------------------------
# Deterministic parameter init (mirrors the PyTorch module's __init__)
# ----------------------------------------------------------------------------
def init_params(key, Cin, Cmid, hidden):
    k_conv, k_bconv, k_w1, k_b1 = jax.random.split(key, 4)
    # Conv2d: kaiming_normal_(mode='fan_out', nonlinearity='relu')
    w_conv = jax.random.normal(k_conv, (3, 3, Cin, Cmid), jnp.float32) \
        * math.sqrt(2.0 / (Cmid * 9))
    fan_in_conv = Cin * 9
    b_conv = jax.random.uniform(k_bconv, (Cmid,), jnp.float32,
                                -1.0 / math.sqrt(fan_in_conv),
                                1.0 / math.sqrt(fan_in_conv))
    # BatchNorm2d: weight=1, bias=0 (+ default running stats)
    bn_gamma = jnp.ones((Cmid,), jnp.float32)
    bn_beta = jnp.zeros((Cmid,), jnp.float32)
    bn_mean = jnp.zeros((Cmid,), jnp.float32)
    bn_var = jnp.ones((Cmid,), jnp.float32)
    # fc_loc[0]: default torch Linear init
    bound1 = 1.0 / math.sqrt(Cmid)
    w_fc1 = jax.random.uniform(k_w1, (Cmid, hidden), jnp.float32, -bound1, bound1)
    b_fc1 = jax.random.uniform(k_b1, (hidden,), jnp.float32, -bound1, bound1)
    # fc_loc[2]: weight zeroed, bias = path_postion
    w_fc2 = jnp.zeros((hidden, 18), jnp.float32)
    b_fc2 = jnp.array([1, 1 / 3, 1 / 3, 1, 1 / 3, 1 / 3,
                       1, 1 / 3, 1 / 3, 1, 1 / 3, 1 / 3,
                       1, 1 / 3, 1 / 3, 1, 1 / 3, 1 / 3], jnp.float32)
    return dict(w_conv=w_conv, b_conv=b_conv,
                bn_gamma=bn_gamma, bn_beta=bn_beta, bn_mean=bn_mean, bn_var=bn_var,
                w_fc1=w_fc1, b_fc1=b_fc1, w_fc2=w_fc2, b_fc2=b_fc2)


# ----------------------------------------------------------------------------
# Pure-JAX reference (for correctness check; matches the kernel's bf16 rounding
# of the conv inputs, accumulation stays f32 in both)
# ----------------------------------------------------------------------------
def reference_forward(x_nchw, params):
    x = jnp.transpose(x_nchw, (0, 2, 3, 1)).astype(jnp.bfloat16).astype(jnp.float32)
    w = params["w_conv"].astype(jnp.bfloat16).astype(jnp.float32)
    z = lax.conv_general_dilated(x, w, (1, 1), "VALID",
                                 dimension_numbers=("NHWC", "HWIO", "NHWC"),
                                 precision=lax.Precision.HIGHEST)
    z = z + params["b_conv"]
    eps = 1e-5
    z = (z - params["bn_mean"]) / jnp.sqrt(params["bn_var"] + eps) \
        * params["bn_gamma"] + params["bn_beta"]
    z = jnp.maximum(z, 0.0)
    z = lax.reduce_window(z, -jnp.inf, lax.max, (1, 3, 3, 1), (1, 2, 2, 1),
                          ((0, 0), (1, 1), (1, 1), (0, 0)))
    pooled = jnp.mean(z, axis=(1, 2))
    h = jnp.maximum(pooled @ params["w_fc1"] + params["b_fc1"], 0.0)
    theta = h @ params["w_fc2"] + params["b_fc2"]
    return theta.reshape(-1, 3, 2, 3), pooled


if __name__ == "__main__":
    # Small demo shapes (original module: Cin=2048, Cmid=4096, hidden=512).
    # Grid is (2, 1, 2) with 128-wide Cin/Cmid tiles and the whole batch packed
    # into M, so the accumulator / pl.when init-finalize paths are exercised.
    B, Cin, H, W = 2, 256, 6, 6
    Cmid, hidden = 256, 64

    key = jax.random.PRNGKey(0)
    k_params, k_x = jax.random.split(key)
    params = init_params(k_params, Cin, Cmid, hidden)
    x = jax.random.normal(k_x, (B, Cin, H, W), jnp.float32)

    theta, pooled = patch_generator_forward(x, params)
    theta = jax.block_until_ready(theta)
    pooled = jax.block_until_ready(pooled)

    theta_ref, pooled_ref = reference_forward(x, params)
    assert theta.shape == (B, 3, 2, 3), theta.shape
    err_pool = float(jnp.max(jnp.abs(pooled - pooled_ref)))
    err_theta = float(jnp.max(jnp.abs(theta - theta_ref)))
    assert err_pool < 2e-3, f"pooled mismatch: {err_pool}"
    assert err_theta < 1e-3, f"theta mismatch: {err_theta}"
    print("KERNEL_OK")
</pallas_src>

<mosaic_0001>
module attributes {stable_mosaic.version = 11 : i64} {
  func.func @kernel(%arg0: i32, %arg1: i32, %arg2: i32, %arg3: memref<72x128xbf16, #tpu.memory_space<vmem>>, %arg4: memref<9x128x128xbf16, #tpu.memory_space<vmem>>, %arg5: memref<1x128xf32, #tpu.memory_space<vmem>>, %arg6: memref<1x128xf32, #tpu.memory_space<vmem>>, %arg7: memref<2x128xf32, #tpu.memory_space<vmem>>, %arg8: memref<72x128xf32, #tpu.memory_space<vmem>>) attributes {dimension_semantics = [#tpu.dimension_semantics<parallel>, #tpu.dimension_semantics<parallel>, #tpu.dimension_semantics<arbitrary>], iteration_bounds = array<i64: 2, 1, 2>, scalar_prefetch = 0 : i64, scratch_operands = 1 : i64, tpu.core_type = #tpu.core_type<tc>, window_params = [{transform_indices = @transform_0, window_bounds = array<i64: 72, 128>}, {transform_indices = @transform_1, window_bounds = array<i64: 9, 128, 128>}, {transform_indices = @transform_2, window_bounds = array<i64: 1, 128>}, {transform_indices = @transform_3, window_bounds = array<i64: 1, 128>}, {transform_indices = @transform_4, window_bounds = array<i64: 2, 128>}]} {
    %c0_i32 = arith.constant 0 : i32
    %0 = arith.cmpi eq, %arg2, %c0_i32 : i32
    %1 = arith.extui %0 : i1 to i32
    %c0_i32_0 = arith.constant 0 : i32
    %2 = arith.cmpi ne, %1, %c0_i32_0 : i32
    scf.if %2 {
      %cst_66 = arith.constant 0.000000e+00 : f32
      %69 = vector.broadcast %cst_66 : f32 to vector<72x128xf32>
      %c0_67 = arith.constant 0 : index
      %c0_68 = arith.constant 0 : index
      %70 = vector.load %arg8[%c0_67, %c0_68] : memref<72x128xf32, #tpu.memory_space<vmem>>, vector<72x128xf32>
      tpu.vector_store %arg8[%c0_67, %c0_68], %69 {strides = array<i32>} : memref<72x128xf32, #tpu.memory_space<vmem>>, vector<72x128xf32>,
    } else {
    }
    %c0 = arith.constant 0 : index
    %c0_1 = arith.constant 0 : index
    %3 = vector.load %arg3[%c0, %c0_1] : memref<72x128xbf16, #tpu.memory_space<vmem>>, vector<72x128xbf16>
    %c0_2 = arith.constant 0 : index
    %c0_3 = arith.constant 0 : index
    %c0_4 = arith.constant 0 : index
    %4 = vector.load %arg4[%c0_2, %c0_3, %c0_4] : memref<9x128x128xbf16, #tpu.memory_space<vmem>>, vector<1x128x128xbf16>
    %5 = vector.shape_cast %4 : vector<1x128x128xbf16> to vector<128x128xbf16>
    %cst = arith.constant dense<0.000000e+00> : vector<72x128xf32>
    %6 = tpu.matmul %3, %5, %cst {dimension_numbers = #tpu.dot_dimension_numbers<[1], [0], [0], [1], [0, 0, 1, 1], [], []>} : vector<72x128xbf16>, vector<128x128xbf16>, vector<72x128xf32> -> vector<72x128xf32>
    %c0_5 = arith.constant 0 : index
    %c0_6 = arith.constant 0 : index
    %7 = vector.load %arg8[%c0_5, %c0_6] : memref<72x128xf32, #tpu.memory_space<vmem>>, vector<72x128xf32>
    %8 = arith.addf %7, %6 : vector<72x128xf32>
    %c0_7 = arith.constant 0 : index
    %c0_8 = arith.constant 0 : index
    %9 = vector.load %arg8[%c0_7, %c0_8] : memref<72x128xf32, #tpu.memory_space<vmem>>, vector<72x128xf32>
    tpu.vector_store %arg8[%c0_7, %c0_8], %8 {strides = array<i32>} : memref<72x128xf32, #tpu.memory_space<vmem>>, vector<72x128xf32>,
    %c1 = arith.constant 1 : index
    %c0_9 = arith.constant 0 : index
    %c0_10 = arith.constant 0 : index
    %10 = vector.load %arg4[%c1, %c0_9, %c0_10] : memref<9x128x128xbf16, #tpu.memory_space<vmem>>, vector<1x128x128xbf16>
    %11 = vector.shape_cast %10 : vector<1x128x128xbf16> to vector<128x128xbf16>
    %cst_11 = arith.constant dense<0.000000e+00> : vector<72x128xf32>
    %12 = tpu.matmul %3, %11, %cst_11 {dimension_numbers = #tpu.dot_dimension_numbers<[1], [0], [0], [1], [0, 0, 1, 1], [], []>} : vector<72x128xbf16>, vector<128x128xbf16>, vector<72x128xf32> -> vector<72x128xf32>
    %c0_12 = arith.constant 0 : index
    %c0_13 = arith.constant 0 : index
    %13 = vector.load %arg8[%c0_12, %c0_13] : memref<72x128xf32, #tpu.memory_space<vmem>>, vector<71x128xf32>
    %14 = vector.extract_strided_slice %12 {offsets = [1, 0], sizes = [71, 128], strides = [1, 1]} : vector<72x128xf32> to vector<71x128xf32>
    %15 = arith.addf %13, %14 : vector<71x128xf32>
    %c0_14 = arith.constant 0 : index
    %c0_15 = arith.constant 0 : index
    %16 = vector.load %arg8[%c0_14, %c0_15] : memref<72x128xf32, #tpu.memory_space<vmem>>, vector<71x128xf32>
    tpu.vector_store %arg8[%c0_14, %c0_15], %15 {strides = array<i32>} : memref<72x128xf32, #tpu.memory_space<vmem>>, vector<71x128xf32>,
    %c2 = arith.constant 2 : index
    %c0_16 = arith.constant 0 : index
    %c0_17 = arith.constant 0 : index
    %17 = vector.load %arg4[%c2, %c0_16, %c0_17] : memref<9x128x128xbf16, #tpu.memory_space<vmem>>, vector<1x128x128xbf16>
    %18 = vector.shape_cast %17 : vector<1x128x128xbf16> to vector<128x128xbf16>
    %cst_18 = arith.constant dense<0.000000e+00> : vector<72x128xf32>
    %19 = tpu.matmul %3, %18, %cst_18 {dimension_numbers = #tpu.dot_dimension_numbers<[1], [0], [0], [1], [0, 0, 1, 1], [], []>} : vector<72x128xbf16>, vector<128x128xbf16>, vector<72x128xf32> -> vector<72x128xf32>
    %c0_19 = arith.constant 0 : index
    %c0_20 = arith.constant 0 : index
    %20 = vector.load %arg8[%c0_19, %c0_20] : memref<72x128xf32, #tpu.memory_space<vmem>>, vector<70x128xf32>
    %21 = vector.extract_strided_slice %19 {offsets = [2, 0], sizes = [70, 128], strides = [1, 1]} : vector<72x128xf32> to vector<70x128xf32>
    %22 = arith.addf %20, %21 : vector<70x128xf32>
    %c0_21 = arith.constant 0 : index
    %c0_22 = arith.constant 0 : index
    %23 = vector.load %arg8[%c0_21, %c0_22] : memref<72x128xf32, #tpu.memory_space<vmem>>, vector<70x128xf32>
    tpu.vector_store %arg8[%c0_21, %c0_22], %22 {strides = array<i32>} : memref<72x128xf32, #tpu.memory_space<vmem>>, vector<70x128xf32>,
    %c3 = arith.constant 3 : index
    %c0_23 = arith.constant 0 : index
    %c0_24 = arith.constant 0 : index
    %24 = vector.load %arg4[%c3, %c0_23, %c0_24] : memref<9x128x128xbf16, #tpu.memory_space<vmem>>, vector<1x128x128xbf16>
    %25 = vector.shape_cast %24 : vector<1x128x128xbf16> to vector<128x128xbf16>
    %cst_25 = arith.constant dense<0.000000e+00> : vector<72x128xf32>
    %26 = tpu.matmul %3, %25, %cst_25 {dimension_numbers = #tpu.dot_dimension_numbers<[1], [0], [0], [1], [0, 0, 1, 1], [], []>} : vector<72x128xbf16>, vector<128x128xbf16>, vector<72x128xf32> -> vector<72x128xf32>
    %c0_26 = arith.constant 0 : index
    %c0_27 = arith.constant 0 : index
    %27 = vector.load %arg8[%c0_26, %c0_27] : memref<72x128xf32, #tpu.memory_space<vmem>>, vector<66x128xf32>
    %28 = vector.extract_strided_slice %26 {offsets = [6, 0], sizes = [66, 128], strides = [1, 1]} : vector<72x128xf32> to vector<66x128xf32>
    %29 = arith.addf %27, %28 : vector<66x128xf32>
    %c0_28 = arith.constant 0 : index
    %c0_29 = arith.constant 0 : index
    %30 = vector.load %arg8[%c0_28, %c0_29] : memref<72x128xf32, #tpu.memory_space<vmem>>, vector<66x128xf32>
    tpu.vector_store %arg8[%c0_28, %c0_29], %29 {strides = array<i32>} : memref<72x128xf32, #tpu.memory_space<vmem>>, vector<66x128xf32>,
    %c4 = arith.constant 4 : index
    %c0_30 = arith.constant 0 : index
    %c0_31 = arith.constant 0 : index
    %31 = vector.load %arg4[%c4, %c0_30, %c0_31] : memref<9x128x128xbf16, #tpu.memory_space<vmem>>, vector<1x128x128xbf16>
    %32 = vector.shape_cast %31 : vector<1x128x128xbf16> to vector<128x128xbf16>
    %cst_32 = arith.constant dense<0.000000e+00> : vector<72x128xf32>
    %33 = tpu.matmul %3, %32, %cst_32 {dimension_numbers = #tpu.dot_dimension_numbers<[1], [0], [0], [1], [0, 0, 1, 1], [], []>} : vector<72x128xbf16>, vector<128x128xbf16>, vector<72x128xf32> -> vector<72x128xf32>
    %c0_33 = arith.constant 0 : index
    %c0_34 = arith.constant 0 : index
    %34 = vector.load %arg8[%c0_33, %c0_34] : memref<72x128xf32, #tpu.memory_space<vmem>>, vector<65x128xf32>
    %35 = vector.extract_strided_slice %33 {offsets = [7, 0], sizes = [65, 128], strides = [1, 1]} : vector<72x128xf32> to vector<65x128xf32>
    %36 = arith.addf %34, %35 : vector<65x128xf32>
    %c0_35 = arith.constant 0 : index
    %c0_36 = arith.constant 0 : index
    %37 = vector.load %arg8[%c0_35, %c0_36] : memref<72x128xf32, #tpu.memory_space<vmem>>, vector<65x128xf32>
    tpu.vector_store %arg8[%c0_35, %c0_36], %36 {strides = array<i32>} : memref<72x128xf32, #tpu.memory_space<vmem>>, vector<65x128xf32>,
    %c5 = arith.constant 5 : index
    %c0_37 = arith.constant 0 : index
    %c0_38 = arith.constant 0 : index
    %38 = vector.load %arg4[%c5, %c0_37, %c0_38] : memref<9x128x128xbf16, #tpu.memory_space<vmem>>, vector<1x128x128xbf16>
    %39 = vector.shape_cast %38 : vector<1x128x128xbf16> to vector<128x128xbf16>
    %cst_39 = arith.constant dense<0.000000e+00> : vector<72x128xf32>
    %40 = tpu.matmul %3, %39, %cst_39 {dimension_numbers = #tpu.dot_dimension_numbers<[1], [0], [0], [1], [0, 0, 1, 1], [], []>} : vector<72x128xbf16>, vector<128x128xbf16>, vector<72x128xf32> -> vector<72x128xf32>
    %c0_40 = arith.constant 0 : index
    %c0_41 = arith.constant 0 : index
    %41 = vector.load %arg8[%c0_40, %c0_41] : memref<72x128xf32, #tpu.memory_space<vmem>>, vector<64x128xf32>
    %42 = vector.extract_strided_slice %40 {offsets = [8, 0], sizes = [64, 128], strides = [1, 1]} : vector<72x128xf32> to vector<64x128xf32>
    %43 = arith.addf %41, %42 : vector<64x128xf32>
    %c0_42 = arith.constant 0 : index
    %c0_43 = arith.constant 0 : index
    %44 = vector.load %arg8[%c0_42, %c0_43] : memref<72x128xf32, #tpu.memory_space<vmem>>, vector<64x128xf32>
    tpu.vector_store %arg8[%c0_42, %c0_43], %43 {strides = array<i32>} : memref<72x128xf32, #tpu.memory_space<vmem>>, vector<64x128xf32>,
    %c6 = arith.constant 6 : index
    %c0_44 = arith.constant 0 : index
    %c0_45 = arith.constant 0 : index
    %45 = vector.load %arg4[%c6, %c0_44, %c0_45] : memref<9x128x128xbf16, #tpu.memory_space<vmem>>, vector<1x128x128xbf16>
    %46 = vector.shape_cast %45 : vector<1x128x128xbf16> to vector<128x128xbf16>
    %cst_46 = arith.constant dense<0.000000e+00> : vector<72x128xf32>
    %47 = tpu.matmul %3, %46, %cst_46 {dimension_numbers = #tpu.dot_dimension_numbers<[1], [0], [0], [1], [0, 0, 1, 1], [], []>} : vector<72x128xbf16>, vector<128x128xbf16>, vector<72x128xf32> -> vector<72x128xf32>
    %c0_47 = arith.constant 0 : index
    %c0_48 = arith.constant 0 : index
    %48 = vector.load %arg8[%c0_47, %c0_48] : memref<72x128xf32, #tpu.memory_space<vmem>>, vector<60x128xf32>
    %49 = vector.extract_strided_slice %47 {offsets = [12, 0], sizes = [60, 128], strides = [1, 1]} : vector<72x128xf32> to vector<60x128xf32>
    %50 = arith.addf %48, %49 : vector<60x128xf32>
    %c0_49 = arith.constant 0 : index
    %c0_50 = arith.constant 0 : index
    %51 = vector.load %arg8[%c0_49, %c0_50] : memref<72x128xf32, #tpu.memory_space<vmem>>, vector<60x128xf32>
    tpu.vector_store %arg8[%c0_49, %c0_50], %50 {strides = array<i32>} : memref<72x128xf32, #tpu.memory_space<vmem>>, vector<60x128xf32>,
    %c7 = arith.constant 7 : index
    %c0_51 = arith.constant 0 : index
    %c0_52 = arith.constant 0 : index
    %52 = vector.load %arg4[%c7, %c0_51, %c0_52] : memref<9x128x128xbf16, #tpu.memory_space<vmem>>, vector<1x128x128xbf16>
    %53 = vector.shape_cast %52 : vector<1x128x128xbf16> to vector<128x128xbf16>
    %cst_53 = arith.constant dense<0.000000e+00> : vector<72x128xf32>
    %54 = tpu.matmul %3, %53, %cst_53 {dimension_numbers = #tpu.dot_dimension_numbers<[1], [0], [0], [1], [0, 0, 1, 1], [], []>} : vector<72x128xbf16>, vector<128x128xbf16>, vector<72x128xf32> -> vector<72x128xf32>
    %c0_54 = arith.constant 0 : index
    %c0_55 = arith.constant 0 : index
    %55 = vector.load %arg8[%c0_54, %c0_55] : memref<72x128xf32, #tpu.memory_space<vmem>>, vector<59x128xf32>
    %56 = vector.extract_strided_slice %54 {offsets = [13, 0], sizes = [59, 128], strides = [1, 1]} : vector<72x128xf32> to vector<59x128xf32>
    %57 = arith.addf %55, %56 : vector<59x128xf32>
    %c0_56 = arith.constant 0 : index
    %c0_57 = arith.constant 0 : index
    %58 = vector.load %arg8[%c0_56, %c0_57] : memref<72x128xf32, #tpu.memory_space<vmem>>, vector<59x128xf32>
    tpu.vector_store %arg8[%c0_56, %c0_57], %57 {strides = array<i32>} : memref<72x128xf32, #tpu.memory_space<vmem>>, vector<59x128xf32>,
    %c8 = arith.constant 8 : index
    %c0_58 = arith.constant 0 : index
    %c0_59 = arith.constant 0 : index
    %59 = vector.load %arg4[%c8, %c0_58, %c0_59] : memref<9x128x128xbf16, #tpu.memory_space<vmem>>, vector<1x128x128xbf16>
    %60 = vector.shape_cast %59 : vector<1x128x128xbf16> to vector<128x128xbf16>
    %cst_60 = arith.constant dense<0.000000e+00> : vector<72x128xf32>
    %61 = tpu.matmul %3, %60, %cst_60 {dimension_numbers = #tpu.dot_dimension_numbers<[1], [0], [0], [1], [0, 0, 1, 1], [], []>} : vector<72x128xbf16>, vector<128x128xbf16>, vector<72x128xf32> -> vector<72x128xf32>
    %c0_61 = arith.constant 0 : index
    %c0_62 = arith.constant 0 : index
    %62 = vector.load %arg8[%c0_61, %c0_62] : memref<72x128xf32, #tpu.memory_space<vmem>>, vector<58x128xf32>
    %63 = vector.extract_strided_slice %61 {offsets = [14, 0], sizes = [58, 128], strides = [1, 1]} : vector<72x128xf32> to vector<58x128xf32>
    %64 = arith.addf %62, %63 : vector<58x128xf32>
    %c0_63 = arith.constant 0 : index
    %c0_64 = arith.constant 0 : index
    %65 = vector.load %arg8[%c0_63, %c0_64] : memref<72x128xf32, #tpu.memory_space<vmem>>, vector<58x128xf32>
    tpu.vector_store %arg8[%c0_63, %c0_64], %64 {strides = array<i32>} : memref<72x128xf32, #tpu.memory_space<vmem>>, vector<58x128xf32>,
    %c1_i32 = arith.constant 1 : i32
    %66 = arith.cmpi eq, %arg2, %c1_i32 : i32
    %67 = arith.extui %66 : i1 to i32
    %c0_i32_65 = arith.constant 0 : i32
    %68 = arith.cmpi ne, %67, %c0_i32_65 : i32
    scf.if %68 {
      %c0_66 = arith.constant 0 : index
      %c0_67 = arith.constant 0 : index
      %69 = vector.load %arg8[%c0_66, %c0_67] : memref<72x128xf32, #tpu.memory_space<vmem>>, vector<72x128xf32>
      %c0_68 = arith.constant 0 : index
      %c0_69 = arith.constant 0 : index
      %70 = vector.load %arg5[%c0_68, %c0_69] : memref<1x128xf32, #tpu.memory_space<vmem>>, vector<1x128xf32>
      %71 = vector.broadcast %70 : vector<1x128xf32> to vector<72x128xf32>
      %72 = arith.mulf %69, %71 : vector<72x128xf32>
      %c0_70 = arith.constant 0 : index
      %c0_71 = arith.constant 0 : index
      %73 = vector.load %arg6[%c0_70, %c0_71] : memref<1x128xf32, #tpu.memory_space<vmem>>, vector<1x128xf32>
      %74 = vector.broadcast %73 : vector<1x128xf32> to vector<72x128xf32>
      %75 = arith.addf %72, %74 : vector<72x128xf32>
      %cst_72 = arith.constant 0.000000e+00 : f32
      %76 = vector.broadcast %cst_72 : f32 to vector<72x128xf32>
      %77 = arith.maximumf %75, %76 : vector<72x128xf32>
      %78 = vector.extract_strided_slice %77 {offsets = [0, 0], sizes = [2, 128], strides = [1, 1]} : vector<72x128xf32> to vector<2x128xf32>
      %cst_73 = arith.constant dense<0xFF800000> : vector<128xf32>
      %79 = vector.multi_reduction <maximumf>, %78, %cst_73 [0] : vector<2x128xf32> to vector<128xf32>
      %80 = vector.shape_cast %79 : vector<128xf32> to vector<1x128xf32>
      %81 = vector.extract_strided_slice %77 {offsets = [1, 0], sizes = [3, 128], strides = [1, 1]} : vector<72x128xf32> to vector<3x128xf32>
      %cst_74 = arith.constant dense<0xFF800000> : vector<128xf32>
      %82 = vector.multi_reduction <maximumf>, %81, %cst_74 [0] : vector<3x128xf32> to vector<128xf32>
      %83 = vector.shape_cast %82 : vector<128xf32> to vector<1x128xf32>
      %84 = vector.extract_strided_slice %77 {offsets = [6, 0], sizes = [2, 128], strides = [1, 1]} : vector<72x128xf32> to vector<2x128xf32>
      %cst_75 = arith.constant dense<0xFF800000> : vector<128xf32>
      %85 = vector.multi_reduction <maximumf>, %84, %cst_75 [0] : vector<2x128xf32> to vector<128xf32>
      %86 = vector.shape_cast %85 : vector<128xf32> to vector<1x128xf32>
      %87 = vector.extract_strided_slice %77 {offsets = [7, 0], sizes = [3, 128], strides = [1, 1]} : vector<72x128xf32> to vector<3x128xf32>
      %cst_76 = arith.constant dense<0xFF800000> : vector<128xf32>
      %88 = vector.multi_reduction <maximumf>, %87, %cst_76 [0] : vector<3x128xf32> to vector<128xf32>
      %89 = vector.shape_cast %88 : vector<128xf32> to vector<1x128xf32>
      %90 = vector.extract_strided_slice %77 {offsets = [12, 0], sizes = [2, 128], strides = [1, 1]} : vector<72x128xf32> to vector<2x128xf32>
      %cst_77 = arith.constant dense<0xFF800000> : vector<128xf32>
      %91 = vector.multi_reduction <maximumf>, %90, %cst_77 [0] : vector<2x128xf32> to vector<128xf32>
      %92 = vector.shape_cast %91 : vector<128xf32> to vector<1x128xf32>
      %93 = vector.extract_strided_slice %77 {offsets = [13, 0], sizes = [3, 128], strides = [1, 1]} : vector<72x128xf32> to vector<3x128xf32>
      %cst_78 = arith.constant dense<0xFF800000> : vector<128xf32>
      %94 = vector.multi_reduction <maximumf>, %93, %cst_78 [0] : vector<3x128xf32> to vector<128xf32>
      %95 = vector.shape_cast %94 : vector<128xf32> to vector<1x128xf32>
      %96 = vector.extract_strided_slice %77 {offsets = [18, 0], sizes = [2, 128], strides = [1, 1]} : vector<72x128xf32> to vector<2x128xf32>
      %cst_79 = arith.constant dense<0xFF800000> : vector<128xf32>
      %97 = vector.multi_reduction <maximumf>, %96, %cst_79 [0] : vector<2x128xf32> to vector<128xf32>
      %98 = vector.shape_cast %97 : vector<128xf32> to vector<1x128xf32>
      %99 = vector.extract_strided_slice %77 {offsets = [19, 0], sizes = [3, 128], strides = [1, 1]} : vector<72x128xf32> to vector<3x128xf32>
      %cst_80 = arith.constant dense<0xFF800000> : vector<128xf32>
      %100 = vector.multi_reduction <maximumf>, %99, %cst_80 [0] : vector<3x128xf32> to vector<128xf32>
      %101 = vector.shape_cast %100 : vector<128xf32> to vector<1x128xf32>
      %102 = arith.maximumf %80, %86 : vector<1x128xf32>
      %103 = arith.maximumf %83, %89 : vector<1x128xf32>
      %104 = arith.addf %102, %103 : vector<1x128xf32>
      %105 = arith.maximumf %86, %92 : vector<1x128xf32>
      %106 = arith.maximumf %105, %98 : vector<1x128xf32>
      %107 = arith.addf %104, %106 : vector<1x128xf32>
      %108 = arith.maximumf %89, %95 : vector<1x128xf32>
      %109 = arith.maximumf %108, %101 : vector<1x128xf32>
      %110 = arith.addf %107, %109 : vector<1x128xf32>
      %cst_81 = arith.constant 2.500000e-01 : f32
      %111 = vector.broadcast %cst_81 : f32 to vector<1x128xf32>
      %112 = arith.mulf %110, %111 : vector<1x128xf32>
      %c0_82 = arith.constant 0 : index
      %c0_83 = arith.constant 0 : index
      %113 = vector.load %arg7[%c0_82, %c0_83] : memref<2x128xf32, #tpu.memory_space<vmem>>, vector<1x128xf32>
      tpu.vector_store %arg7[%c0_82, %c0_83], %112 {strides = array<i32>} : memref<2x128xf32, #tpu.memory_space<vmem>>, vector<1x128xf32>,
      %114 = vector.extract_strided_slice %77 {offsets = [36, 0], sizes = [2, 128], strides = [1, 1]} : vector<72x128xf32> to vector<2x128xf32>
      %cst_84 = arith.constant dense<0xFF800000> : vector<128xf32>
      %115 = vector.multi_reduction <maximumf>, %114, %cst_84 [0] : vector<2x128xf32> to vector<128xf32>
      %116 = vector.shape_cast %115 : vector<128xf32> to vector<1x128xf32>
      %117 = vector.extract_strided_slice %77 {offsets = [37, 0], sizes = [3, 128], strides = [1, 1]} : vector<72x128xf32> to vector<3x128xf32>
      %cst_85 = arith.constant dense<0xFF800000> : vector<128xf32>
      %118 = vector.multi_reduction <maximumf>, %117, %cst_85 [0] : vector<3x128xf32> to vector<128xf32>
      %119 = vector.shape_cast %118 : vector<128xf32> to vector<1x128xf32>
      %120 = vector.extract_strided_slice %77 {offsets = [42, 0], sizes = [2, 128], strides = [1, 1]} : vector<72x128xf32> to vector<2x128xf32>
      %cst_86 = arith.constant dense<0xFF800000> : vector<128xf32>
      %121 = vector.multi_reduction <maximumf>, %120, %cst_86 [0] : vector<2x128xf32> to vector<128xf32>
      %122 = vector.shape_cast %121 : vector<128xf32> to vector<1x128xf32>
      %123 = vector.extract_strided_slice %77 {offsets = [43, 0], sizes = [3, 128], strides = [1, 1]} : vector<72x128xf32> to vector<3x128xf32>
      %cst_87 = arith.constant dense<0xFF800000> : vector<128xf32>
      %124 = vector.multi_reduction <maximumf>, %123, %cst_87 [0] : vector<3x128xf32> to vector<128xf32>
      %125 = vector.shape_cast %124 : vector<128xf32> to vector<1x128xf32>
      %126 = vector.extract_strided_slice %77 {offsets = [48, 0], sizes = [2, 128], strides = [1, 1]} : vector<72x128xf32> to vector<2x128xf32>
      %cst_88 = arith.constant dense<0xFF800000> : vector<128xf32>
      %127 = vector.multi_reduction <maximumf>, %126, %cst_88 [0] : vector<2x128xf32> to vector<128xf32>
      %128 = vector.shape_cast %127 : vector<128xf32> to vector<1x128xf32>
      %129 = vector.extract_strided_slice %77 {offsets = [49, 0], sizes = [3, 128], strides = [1, 1]} : vector<72x128xf32> to vector<3x128xf32>
      %cst_89 = arith.constant dense<0xFF800000> : vector<128xf32>
      %130 = vector.multi_reduction <maximumf>, %129, %cst_89 [0] : vector<3x128xf32> to vector<128xf32>
      %131 = vector.shape_cast %130 : vector<128xf32> to vector<1x128xf32>
      %132 = vector.extract_strided_slice %77 {offsets = [54, 0], sizes = [2, 128], strides = [1, 1]} : vector<72x128xf32> to vector<2x128xf32>
      %cst_90 = arith.constant dense<0xFF800000> : vector<128xf32>
      %133 = vector.multi_reduction <maximumf>, %132, %cst_90 [0] : vector<2x128xf32> to vector<128xf32>
      %134 = vector.shape_cast %133 : vector<128xf32> to vector<1x128xf32>
      %135 = vector.extract_strided_slice %77 {offsets = [55, 0], sizes = [3, 128], strides = [1, 1]} : vector<72x128xf32> to vector<3x128xf32>
      %cst_91 = arith.constant dense<0xFF800000> : vector<128xf32>
      %136 = vector.multi_reduction <maximumf>, %135, %cst_91 [0] : vector<3x128xf32> to vector<128xf32>
      %137 = vector.shape_cast %136 : vector<128xf32> to vector<1x128xf32>
      %138 = arith.maximumf %116, %122 : vector<1x128xf32>
      %139 = arith.maximumf %119, %125 : vector<1x128xf32>
      %140 = arith.addf %138, %139 : vector<1x128xf32>
      %141 = arith.maximumf %122, %128 : vector<1x128xf32>
      %142 = arith.maximumf %141, %134 : vector<1x128xf32>
      %143 = arith.addf %140, %142 : vector<1x128xf32>
      %144 = arith.maximumf %125, %131 : vector<1x128xf32>
      %145 = arith.maximumf %144, %137 : vector<1x128xf32>
      %146 = arith.addf %143, %145 : vector<1x128xf32>
      %cst_92 = arith.constant 2.500000e-01 : f32
      %147 = vector.broadcast %cst_92 : f32 to vector<1x128xf32>
      %148 = arith.mulf %146, %147 : vector<1x128xf32>
      %c1_93 = arith.constant 1 : index
      %c0_94 = arith.constant 0 : index
      %149 = vector.load %arg7[%c1_93, %c0_94] : memref<2x128xf32, #tpu.memory_space<vmem>>, vector<1x128xf32>
      tpu.vector_store %arg7[%c1_93, %c0_94], %148 {strides = array<i32>} : memref<2x128xf32, #tpu.memory_space<vmem>>, vector<1x128xf32>,
    } else {
    }
    return
  }
  func.func @transform_0(%arg0: i32, %arg1: i32, %arg2: i32) -> (i32, i32) {
    %c0_i32 = arith.constant 0 : i32
    return %arg1, %arg2 : i32, i32
  }
  func.func @transform_1(%arg0: i32, %arg1: i32, %arg2: i32) -> (i32, i32, i32) {
    %c0_i32 = arith.constant 0 : i32
    %c0_i32_0 = arith.constant 0 : i32
    return %c0_i32, %arg2, %arg0 : i32, i32, i32
  }
  func.func @transform_2(%arg0: i32, %arg1: i32, %arg2: i32) -> (i32, i32) {
    %c0_i32 = arith.constant 0 : i32
    %c0_i32_0 = arith.constant 0 : i32
    return %c0_i32, %arg0 : i32, i32
  }
  func.func @transform_3(%arg0: i32, %arg1: i32, %arg2: i32) -> (i32, i32) {
    %c0_i32 = arith.constant 0 : i32
    %c0_i32_0 = arith.constant 0 : i32
    return %c0_i32, %arg0 : i32, i32
  }
  func.func @transform_4(%arg0: i32, %arg1: i32, %arg2: i32) -> (i32, i32) {
    %c0_i32 = arith.constant 0 : i32
    return %arg1, %arg0 : i32, i32
  }
}

</mosaic_0001>

<bundles_post_ra>
// kernel: tpu_custom_call.1
= control target key start
LH: loop header
LB: loop body
LE: loop exit
PB: predicated region body
PF: predicated region fallthrough
CT: control target
= control target key end

     0   :  { %s3711_s0 = inlined_call_operand.hbm [shape: bf16[72,256], index: 0, kind: input, shape index: {}]   ;;  %s3712_s1 = inlined_call_operand.hbm [shape: bf16[9,256,256], index: 1, kind: input, shape index: {}]   ;;  %s3713_s2 = inlined_call_operand.hbm [shape: f32[1,256], index: 2, kind: input, shape index: {}]   ;;  %s3714_s3 = inlined_call_operand.hbm [shape: f32[1,256], index: 3, kind: input, shape index: {}]   ;;  %s3715_s4 = inlined_call_operand.hbm [shape: f32[2,256], index: 4, kind: output, shape index: {}]  }
   0x1   :  { %3727 = sst [smem:[#allocation33_spill]] %s3711_s0 }
   0x2   :  { %3728 = sst [smem:[#allocation34_spill]] %s3715_s4 }
   0x3   :  { %9 = vsyncpa [#allocation4], 0 }
   0x4   :  { %11 = vsyncpa [#allocation4 + $0x1], 0 }
   0x5   :  { %12 = vsyncpa [#allocation7], 0 }
   0x6   :  { %14 = vsyncpa [#allocation7 + $0x1], 0 }
   0x7   :  { %15 = vsyncpa [#allocation10], 0 }
   0x8   :  { %17 = vsyncpa [#allocation10 + $0x1], 0 }
   0x9   :  { %18 = vsyncpa [#allocation5], 0 }
   0xa   :  { %20 = vsyncpa [#allocation5 + $0x1], 0  ;;  %s3105_s15 = smov 0   ;;  %s3107_s16 = smov 0  }
   0xb   :  { %s3109_s17 = smov 0   ;;  %s3111_s18 = smov 0  }
   0xc   :  { %s3113_s19 = smov 0   ;;  %s3115_s20 = smov 0  }
   0xd   :  { %s3117_s21 = smov 0   ;;  %s3119_s22 = smov 0  }
   0xe   :  { %s3121_s23 = smov 0   ;;  %s3123_s24 = smov 0  }
   0xf   :  { %s3125_s25 = smov 0   ;;  %s3127_s26 = smov 0  }
  0x10   :  { %s3129_s27 = smov 0   ;;  %s3131_s28 = smov 0  }
  0x11 LB: > { %3729 = sst [smem:[#allocation20_spill]] %s3015_s15  ;;  %s3174_s29 = sadd.s32 4294967295, %s3067_s28   ;;  %s3067_s28 = sphi %s3131_s28, %s26_s28   ;;  %s3063_s27 = sphi %s3129_s27, %s3780_s27   ;;  %s3059_s26 = sphi %s3127_s26, %s3779_s26   ;;  %s3055_s25 = sphi %s3125_s25, %s3778_s25   ;;  %s3051_s24 = sphi %s3123_s24, %s3777_s24   ;;  %s3047_s23 = sphi %s3121_s23, %s3767_s23   ;;  %s3043_s22 = sphi %s3119_s22, %s3776_s22   ;;  %s3039_s21 = sphi %s3117_s21, %s3775_s21   ;;  %s3035_s20 = sphi %s3115_s20, %s3774_s20   ;;  %s3031_s19 = sphi %s3113_s19, %s3773_s19   ;;  %s3027_s18 = sphi %s3111_s18, %s3772_s18   ;;  %s3023_s17 = sphi %s3109_s17, %s3771_s17   ;;  %s3019_s16 = sphi %s3107_s16, %s3770_s16   ;;  %s3015_s15 = sphi %s3105_s15, %s3763_s15  }
  0x12   : > { %3730 = sst [smem:[#allocation21_spill]] %s3019_s16  ;;  %s38_s5 = sadd.s32 1, %s3059_s26 }
  0x13   : > { %3731 = sst [smem:[#allocation22_spill]] %s3047_s23  ;;  %s45_s6 = sadd.s32 1, %s3063_s27 }
  0x14   : > { %3732 = sst [smem:[#allocation23_spill]] %s3051_s24  ;;  %p39_p0 = scmp.ge.s32.totalorder %s38_s5, 2 }
  0x15   : > { %3733 = sst [smem:[#allocation24_spill]] %s3055_s25  ;;  %s54_s7 = sadd.s32 1, %s3047_s23 }
  0x16   : > { %p61_p1 = scmp.ne.s32.totalorder %s3047_s23, %s3043_s22  ;;  %p62_p2 = scmp.eq.s32.totalorder %s3067_s28, 0 }
  0x17   : > { %s3782_s5 = smov (%p39_p0, %s38_s5), 0  ;;  %s3784_s6 = smov (!%p39_p0, %s45_s6), %s3063_s27 }
  0x18   : > { %3734 = sst [smem:[#allocation25_spill]] %s3782_s5  ;;  %s50_s8 = ssub.s32 %s3059_s26, %s3782_s5 }
  0x19   : > { %p3190_p3 = por %p62_p2, %p61_p1  ;;  %p47_p4 = scmp.ge.s32.totalorder %s3784_s6, 2 }
  0x1a   : > { %p52_p5 = scmp.eq.s32.totalorder %s50_s8, 0  ;;  %p67_p6 = scmp.ne.s32.totalorder %s3043_s22, %s3039_s21 }
  0x1b   : > { %p68_p7 = scmp.eq.s32.totalorder %s3174_s29, 0  ;;  %s3786_s6 = smov (%p47_p4, %s3784_s6), 0 }
  0x1c   : > { %3736 = sst [smem:[#allocation26_spill]] %s3786_s6  ;;  %s78_s12 = ssub.s32 %s3063_s27, %s3786_s6 }
  0x1d   : > { %s3199_s10 = scalar_select %p52_p5, %s3047_s23, %s54_s7  }
  0x1e   : > { %p3203_p8 = por %p68_p7, %p67_p6  ;;  %s79_s13 = sor.u32 %s78_s12, %s50_s8 }
  0x1f   : > { %3737 = sst [smem:[#allocation27_spill]] %s3199_s10  ;;  %s82_s14 = sadd.s32 1, %s3035_s20 }
  0x20   : > { %p80_p9 = scmp.eq.s32.totalorder %s79_s13, 0  ;;  %p89_p10 = scmp.ne.s32.totalorder %s3035_s20, %s3031_s19 }
  0x21   : > { %p95_p11 = scmp.ne.s32.totalorder %s3031_s19, %s3027_s18  ;;  %p106_p12 = scmp.eq.s32.totalorder %s78_s12, 0 }
  0x22   : > { %s3215_s21 = scalar_select %p80_p9, %s3035_s20, %s82_s14  }
  0x23   : > { %p3219_p13 = por %p89_p10, %p62_p2  ;;  %p3225_p0 = por %p95_p11, %p68_p7 }
  0x24   : > { %3739 = sst [smem:[#allocation28_spill]] %s3215_s21  ;;  %s108_s6 = sadd.s32 1, %s3023_s17 }
  0x25   : > { %p115_p1 = scmp.ne.s32.totalorder %s3023_s17, %s3019_s16  ;;  %p121_p5 = scmp.ne.s32.totalorder %s3019_s16, %s3015_s15 }
  0x26   : > { %s3233_s8 = scalar_select %p106_p12, %s3023_s17, %s108_s6  }
  0x27   : > { %p3237_p4 = por %p115_p1, %p62_p2  ;;  %p173_p6 = scmp.eq.s32.totalorder %s3174_s29, 3 }
  0x28   : > { %3742 = sst [smem:[#allocation29_spill]] %s3233_s8  ;;  %s3744_s12 = sadd.s32 4294967294, %s3067_s28  }
  0x29   : > { %p179_p9 = scmp.eq.s32.totalorder %s3744_s12, 3  ;;  %p3248_p10 = por %p121_p5, %p68_p7 }
  0x2a   : > { %p3252_p11 = por %p173_p6, %p115_p1  ;;  %p2134_p2 = scmp.ge.s32.totalorder %s3067_s28, 4 }
  0x2b   : > { %s3745_s13 = scalar_select %p3248_p10, 1, 0 }
  0x2c   : > { %s3747_s14 = scalar_select %p3252_p11, 1, 0 }
  0x2d   : > { %3746 = sst [smem:[#allocation30_spill]] %s3745_s13  ;;  %p3256_p12 = por %p179_p9, %p121_p5 }
  0x2e   : > { %3748 = sst [smem:[#allocation31_spill]] %s3747_s14  ;;  %195 = sbr.rel (%p2134_p2) target bundleno = 82 (0x52), region = 16 }
  0x2f   : > { %s3749_s6 = scalar_select %p3256_p12, 1, 0 }
  0x30   : > { %s199_s12 = sand.u32 (!%p2134_p2), 1, %s3047_s23   ;;  %s2135_s5 = sshll.u32 (!%p2134_p2), %s3059_s26, 2 }
  0x31   : > { %3750 = sst [smem:[#allocation32_spill]] %s3749_s6  ;;  %s2674_s10 = smul.u32 (!%p2134_p2), 36, %s199_s12 }
  0x32   : > { %s3751_s0 = sld [smem:[#allocation33_spill]] (!%p2134_p2)  ;;  %s200_s24 = scalar_lea.sflag (!%p2134_p2), [#allocation4], %s199_s12 }
  0x33   : > { %s203_s14 = scalar_lea.vmem [#allocation3], %s2674_s10  ;;  %s3069_s6 = smov 128  }
  0x34   : > { %s213_s25 = sshll.u32 %s203_s14, 4  ;;  %s3070_s13 = smov 64   ;;  %s214_s25 = int_to_ptr.vmem [resolvable:$true] %s213_s25 }
  0x35   : > { %s3071_s16 = smov 4  }
  0x38   : > { %s210_s15 = scalar_lea.hbm %s3751_s0, %s2135_s5 }
  0x39   : > { %s211_s4 = sshll.u32 %s210_s15, 4  ;;  %s212_s4 = int_to_ptr.hbm [resolvable:$true] %s211_s4 }
  0x3a   : > { %2678 = dma.hbm_to_vmem [thread:$0]  (%p3190_p3), %s212_s4, 576, %s214_s25, %s200_s24, %s3069_s6, %s3070_s13, %s3071_s16  }
  0x3b   : > { %s223_s23 = sand.u32 1, %s3067_s28   ;;  %s225_s21 = sand.u32 1, %s3035_s20  }
  0x3c   : > { %s2675_s15 = smul.u32 576, %s225_s21  ;;  %s2581_s5 = sshll.u32 %s3059_s26, 5 }
  0x3d   : > { %s232_s10 = sadd.s32 %s3063_s27, %s2581_s5  ;;  %s3072_s25 = smov 4096  }
  0x3e   : > { %s2138_s8 = sshll.u32 %s232_s10, 2  ;;  %s227_s14 = scalar_lea.vmem [#allocation6], %s2675_s15 }
  0x3f   : > { %s249_s12 = sshll.u32 %s227_s14, 4  ;;  %s234_s4 = scalar_lea.hbm %s3712_s1, %s2138_s8  ;;  %s250_s12 = int_to_ptr.vmem [resolvable:$true] %s249_s12 }
  0x40   : > { %s2679_s16 = scalar_select %p3219_p13, [#allocation0], [#allocation14] }
  0x41   : > { %s247_s24 = sshll.u32 %s234_s4, 4  ;;  %2680 = sst [smem:[#allocation13]] (%p3219_p13), %s3072_s25  ;;  %s248_s24 = int_to_ptr.hbm [resolvable:$true] %s247_s24 }
  0x42   : > { %s239_s13 = sld [smem:[%s2679_s16]]   ;;  %s3073_s6 = smov 1024  }
  0x43   : > { %2681 = sst [smem:[#allocation13 + $0x1]] (%p3219_p13), %s3073_s6  ;;  %s3074_s21 = smov 16  }
  0x44   : > { %2682 = sst [smem:[#allocation13 + $0x2]] (%p3219_p13), %s3074_s21  ;;  %s3075_s0 = smov 128  }
  0x45   : > { %2683 = sst [smem:[#allocation13 + $0x3]] (%p3219_p13), %s3075_s0  ;;  %s3076_s15 = smov 64  }
  0x46   : > { %2684 = sst [smem:[#allocation13 + $0x4]] (%p3219_p13), %s3076_s15  ;;  %s3077_s10 = smov 4  }
  0x47   : > { %2685 = sst [smem:[#allocation13 + $0x5]] (%p3219_p13), %s3077_s10  ;;  %s224_s14 = scalar_lea.sflag [#allocation7], %s223_s23 }
  0x48   : > { %s2139_s5 = sshll.u32 %s239_s13, 26  ;;  %s3078_s9 = smov [#allocation12]  }
  0x49   : > { %s2140_s8 = sadd.s32 134217728, %s2139_s5  ;;  %s274_s4 = sand.u32 1, %s3023_s17  }
  0x4a   : > { %2686 = dma.general (%p3219_p13), %s248_s24, 9216, %s250_s12, %s224_s14, %s3078_s9, [#allocation13], %s2140_s8, 0  }
  0x4b   : > { %s278_s6 = scalar_lea.hbm %s3713_s2, %s3063_s27  ;;  %s275_s13 = scalar_lea.vmem [#allocation8], %s274_s4 }
  0x4c   : > { %s280_s21 = sshll.u32 %s278_s6, 4  ;;  %s282_s0 = sshll.u32 %s275_s13, 4  ;;  %s281_s21 = int_to_ptr.hbm [resolvable:$true] %s280_s21  ;;  %s283_s0 = int_to_ptr.vmem [resolvable:$true] %s282_s0 }
  0x4d   : > { %2687 = dma.hbm_to_vmem [thread:$0]  (%p3237_p4), %s281_s21, 16, %s283_s0, %s224_s14  }
  0x4e   : > { %s295_s12 = scalar_lea.hbm %s3714_s3, %s3063_s27  ;;  %s292_s15 = scalar_lea.vmem [#allocation9], %s274_s4 }
  0x4f   : > { %s297_s24 = sshll.u32 %s295_s12, 4  ;;  %s299_s5 = sshll.u32 %s292_s15, 4  ;;  %s298_s24 = int_to_ptr.hbm [resolvable:$true] %s297_s24  ;;  %s300_s5 = int_to_ptr.vmem [resolvable:$true] %s299_s5 }
  0x50   : > { %s290_s10 = scalar_lea.sflag [#allocation10], %s274_s4 }
  0x51   : > { %2688 = dma.hbm_to_vmem [thread:$0]  (%p3237_p4), %s298_s24, 16, %s300_s5, %s290_s10  }
  0x52 PF: > { %p2141_p3 = scmp.ge.s32.totalorder %s3067_s28, 1  ;;  %p304_p7 = scmp.lt.s32.totalorder %s3067_s28, 5 }
  0x54   : > { %p305_p13 = pnand %p2141_p3, %p304_p7 }
  0x55   : > { %s310_s8 = sand.u32 (!%p305_p13), 1, %s3043_s22  }
  0x56   : > { %308 = sbr.rel (%p305_p13) target bundleno = 578 (0x242), region = 36  ;;  %s311_s9 = scalar_lea.sflag (!%p305_p13), [#allocation4], %s310_s8 }
  0x57   : > { %s2676_s14 = smul.u32 (!%p305_p13), 36, %s310_s8 }
  0x59   : > { %s3307_s16 = scalar_lea.vmem (!%p305_p13), [#allocation3], %s2676_s14 }
  0x5b   : > { %2994 = dma.done.wait (%p3203_p8), %s311_s9, 576  }
  0x5c   : > { %2996 = vsyncadd (%p3203_p8), %s311_s9, 4294966720  ;;  %s320_s18 = sand.u32 1, %s3174_s29   ;;  %s322_s4 = sand.u32 1, %s3031_s19  }
  0x5d   : > { %s2677_s25 = smul.u32 576, %s322_s4  ;;  %s321_s6 = scalar_lea.sflag [#allocation7], %s320_s18 }
  0x5f   : > { %s3315_s21 = scalar_lea.vmem [#allocation6], %s2677_s25 }
  0x60   : > { %2998 = dma.done.wait (%p3225_p0), %s321_s6, 9216  }
  0x61   : > { %3000 = vsyncadd (%p3225_p0), %s321_s6, 4294958080  ;;  %s3752_s13 = sld [smem:[#allocation21_spill]] }
  0x67   : > { %s3322_s23 = sand.u32 1, %s3752_s13  }
  0x68   : > { %s333_s11 = scalar_lea.vmem [#allocation8], %s3322_s23 }
  0x69   : > { %3002 = dma.done.wait (%p3248_p10), %s321_s6, 16  }
  0x6a   : > { %3004 = vsyncadd (%p3248_p10), %s321_s6, 4294967280  ;;  %s340_s29 = scalar_lea.sflag [#allocation10], %s3322_s23  ;;  %s342_s7 = scalar_lea.vmem [#allocation9], %s3322_s23 }
  0x6b   : > { %3006 = dma.done.wait (%p3248_p10), %s340_s29, 16  }
  0x6c   : > { %3008 = vsyncadd (%p3248_p10), %s340_s29, 4294967280  ;;  %s2142_s30 = sshll.u32 %s3322_s23, 1  ;;  %s3754_s24 = sld [smem:[#allocation23_spill]] }
  0x6d   : > { %s3336_s12 = scalar_lea.vmem [#allocation11], %s2142_s30 }
  0x72   : > { %p2143_p8 = scmp.ne.s32.totalorder %s3754_s24, 0 }
  0x74   : > { %386 = sbr.rel (%p2143_p8) target bundleno = 131 (0x83), region = 56 }
  0x79   : > { %v3079_v0 = vmov 0.0  }
  0x7a   : > { %387 = vst [vmem:[#allocation2 + $0x30] sm:$0xff] %v3079_v0 }
  0x7b   : > { %388 = vst [vmem:[#allocation2] sm:$0xff] %v3079_v0 }
  0x7c   : > { %389 = vst [vmem:[#allocation2 + $0x18] sm:$0xff] %v3079_v0 }
  0x7d   : > { %390 = vst [vmem:[#allocation2 + $0x10] sm:$0xff] %v3079_v0 }
  0x7e   : > { %391 = vst [vmem:[#allocation2 + $0x20] sm:$0xff] %v3079_v0 }
  0x7f   : > { %392 = vst [vmem:[#allocation2 + $0x28] sm:$0xff] %v3079_v0 }
  0x80   : > { %393 = vst [vmem:[#allocation2 + $0x40] sm:$0xff] %v3079_v0 }
  0x81   : > { %394 = vst [vmem:[#allocation2 + $0x38] sm:$0xff] %v3079_v0 }
  0x82   : > { %395 = vst [vmem:[#allocation2 + $0x8] sm:$0xff] %v3079_v0 }
  0x83 PF: > { %v2593_v1 = vld [vmem:[%s3315_s21 + $0x38] sm:$0xff]  ;;  %v2592_v2 = vld [vmem:[%s3315_s21 + $0x30] sm:$0xff]  ;;  %v2591_v5 = vld [vmem:[%s3315_s21 + $0x28] sm:$0xff]  ;;  %vm995_vm0 = vcmask 1041408   ;;  %vm673_vm1 = vcmask 1046528   ;;  %vm834_vm2 = vcmask 1045504  }
  0x84   : > { %2658 = vmatpush.bf16.msra.mxu1 %v2593_v1  ;;  %2659 = vmatpush.bf16.msra.mxu2 %v2593_v1  ;;  %v2617_v3 = vld [vmem:[%s3315_s21 + $0xf8] sm:$0xff]  ;;  %v2616_v4 = vld [vmem:[%s3315_s21 + $0xf0] sm:$0xff]  ;;  %v2615_v6 = vld [vmem:[%s3315_s21 + $0xe8] sm:$0xff]  ;;  %vm1156_vm3 = vcmask 1040384   ;;  %vm1435_vm4 = vcmask 1043456   ;;  %vm1588_vm5 = vcmask 1042432  }
  0x85   : > { %497 = vmatpush.bf16.msra.mxu0 %v2593_v1  ;;  %944 = vmatpush.bf16.msra.mxu3 %v2617_v3  ;;  %v2590_v7 = vld [vmem:[%s3315_s21 + $0x20] sm:$0xff]  ;;  %v2589_v9 = vld [vmem:[%s3315_s21 + $0x18] sm:$0xff]  ;;  %v2588_v11 = vld [vmem:[%s3315_s21 + $0x10] sm:$0xff]  ;;  %s3755_s15 = sld [smem:[#allocation23_spill]] }
  0x86   : > { %v2614_v8 = vld [vmem:[%s3315_s21 + $0xe0] sm:$0xff]  ;;  %v2613_v10 = vld [vmem:[%s3315_s21 + $0xd8] sm:$0xff]  ;;  %v2612_v12 = vld [vmem:[%s3315_s21 + $0xd0] sm:$0xff] }
  0x87   : > { %v2587_v13 = vld [vmem:[%s3315_s21 + $0x8] sm:$0xff]  ;;  %v404_v14 = vld [vmem:[%s3307_s16 + $0x20] sm:$0xf]  ;;  %v2586_v17 = vld [vmem:[%s3315_s21] sm:$0xff] }
  0x88   : > { %2660 = vmatpush.bf16.msra.mxu1 %v2592_v2  ;;  %2661 = vmatpush.bf16.msra.mxu2 %v2592_v2  ;;  %v2611_v15 = vld [vmem:[%s3315_s21 + $0xc8] sm:$0xff]  ;;  %v438_v16 = vunpack.c.l.b16 %v404_v14  ;;  %v2609_v18 = vld [vmem:[%s3315_s21 + $0xb8] sm:$0xff]  ;;  %v2610_v20 = vld [vmem:[%s3315_s21 + $0xc0] sm:$0xff] }
  0x89   : > { %498 = vmatpush.bf16.msra.mxu0 %v2592_v2  ;;  %945 = vmatpush.bf16.msra.mxu3 %v2616_v4  ;;  %v2601_v19 = vld [vmem:[%s3315_s21 + $0x78] sm:$0xff]  ;;  %v3359_v21 = vld [vmem:[%s3307_s16 + $0x10] sm:$0xff]  ;;  %v2606_v32 = vld [vmem:[%s3315_s21 + $0xa0] sm:$0xff] }
  0x8a   : > { %v3361_v22 = vpack.c.b16 %v438_v16, %v438_v16  ;;  %v2625_v23 = vld [vmem:[%s3315_s21 + $0x138] sm:$0xff]  ;;  %v2608_v24 = vld [vmem:[%s3315_s21 + $0xb0] sm:$0xff]  ;;  %v2607_v28 = vld [vmem:[%s3315_s21 + $0xa8] sm:$0xff] }
  0x8b   : > { %v2600_v25 = vld [vmem:[%s3315_s21 + $0x70] sm:$0xff]  ;;  %v3367_v26 = vld [vmem:[%s3307_s16] sm:$0xff]  ;;  %v2599_v29 = vld [vmem:[%s3315_s21 + $0x68] sm:$0xff]  ;;  %p2576_p0 = scmp.ne.s32.totalorder %s3755_s15, 1 }
  0x8c   : > { %2662 = vmatpush.bf16.msra.mxu1 %v2591_v5  ;;  %2663 = vmatpush.bf16.msra.mxu2 %v2591_v5  ;;  %v2624_v27 = vld [vmem:[%s3315_s21 + $0x130] sm:$0xff]  ;;  %v2649_v30 = vld [vmem:[%s3315_s21 + $0x1f8] sm:$0xff]  ;;  %v2623_v31 = vld [vmem:[%s3315_s21 + $0x128] sm:$0xff] }
  0x8d   : > { %499 = vmatpush.bf16.msra.mxu0 %v2591_v5  ;;  %946 = vmatpush.bf16.msra.mxu3 %v2615_v6  ;;  %v2598_v33 = vld [vmem:[%s3315_s21 + $0x60] sm:$0xff]  ;;  %v2605_v35 = vld [vmem:[%s3315_s21 + $0x98] sm:$0xff]  ;;  %v2604_v39 = vld [vmem:[%s3315_s21 + $0x90] sm:$0xff] }
  0x8e   : > { %v2622_v34 = vld [vmem:[%s3315_s21 + $0x120] sm:$0xff]  ;;  %v2597_v36 = vld [vmem:[%s3315_s21 + $0x58] sm:$0xff]  ;;  %v2596_v40 = vld [vmem:[%s3315_s21 + $0x50] sm:$0xff] }
  0x8f   : > { %v3384_v37 = vld [vmem:[%s3307_s16 + $0x18] sm:$0xff]  ;;  %v3390_v41 = vld [vmem:[%s3307_s16 + $0x8] sm:$0xff] }
  0x90   : > { %2664 = vmatpush.bf16.msra.mxu1 %v2590_v7  ;;  %2665 = vmatpush.bf16.msra.mxu2 %v2590_v7  ;;  %v2621_v38 = vld [vmem:[%s3315_s21 + $0x118] sm:$0xff]  ;;  %v2648_v42 = vld [vmem:[%s3315_s21 + $0x1f0] sm:$0xff]  ;;  %v2603_v44 = vld [vmem:[%s3315_s21 + $0x88] sm:$0xff] }
  0x91   : > { %500 = vmatpush.bf16.msra.mxu0 %v2590_v7  ;;  %947 = vmatpush.bf16.msra.mxu3 %v2614_v8  ;;  %v2620_v43 = vld [vmem:[%s3315_s21 + $0x110] sm:$0xff]  ;;  %v2595_v45 = vld [vmem:[%s3315_s21 + $0x48] sm:$0xff]  ;;  %v2602_v47 = vld [vmem:[%s3315_s21 + $0x80] sm:$0xff] }
  0x92   : > { %v2619_v46 = vld [vmem:[%s3315_s21 + $0x108] sm:$0xff]  ;;  %v2594_v48 = vld [vmem:[%s3315_s21 + $0x40] sm:$0xff]  ;;  %v2633_v49 = vld [vmem:[%s3315_s21 + $0x178] sm:$0xff] }
  0x93   : > { %v2641_v50 = vld [vmem:[%s3315_s21 + $0x1b8] sm:$0xff]  ;;  %v2618_v51 = vld [vmem:[%s3315_s21 + $0x100] sm:$0xff]  ;;  %v2632_v53 = vld [vmem:[%s3315_s21 + $0x170] sm:$0xff] }
  0x94   : > { %2666 = vmatpush.bf16.msra.mxu1 %v2589_v9  ;;  %2667 = vmatpush.bf16.msra.mxu2 %v2589_v9  ;;  %v2657_v52 = vld [vmem:[%s3315_s21 + $0x238] sm:$0xff]  ;;  %v2640_v54 = vld [vmem:[%s3315_s21 + $0x1b0] sm:$0xff]  ;;  %v2647_v55 = vld [vmem:[%s3315_s21 + $0x1e8] sm:$0xff] }
  0x95   : > { %501 = vmatpush.bf16.msra.mxu0 %v2589_v9  ;;  %948 = vmatpush.bf16.msra.mxu3 %v2613_v10  ;;  %v2631_v56 = vld [vmem:[%s3315_s21 + $0x168] sm:$0xff]  ;;  %v2656_v58 = vld [vmem:[%s3315_s21 + $0x230] sm:$0xff]  ;;  %v2630_v59 = vld [vmem:[%s3315_s21 + $0x160] sm:$0xff] }
  0x96   : > { %v2639_v57 = vld [vmem:[%s3315_s21 + $0x1a8] sm:$0xff]  ;;  %v2646_v60 = vld [vmem:[%s3315_s21 + $0x1e0] sm:$0xff]  ;;  %v2629_v62 = vld [vmem:[%s3315_s21 + $0x158] sm:$0xff] }
  0x97   : > { %v2638_v61 = vld [vmem:[%s3315_s21 + $0x1a0] sm:$0xff]  ;;  %v2637_v63 = vld [vmem:[%s3315_s21 + $0x198] sm:$0xff]  ;;  %v2655_v0 = vld [vmem:[%s3315_s21 + $0x228] sm:$0xff] }
  0x98   : > { %2668 = vmatpush.bf16.msra.mxu1 %v2588_v11  ;;  %2669 = vmatpush.bf16.msra.mxu2 %v2588_v11  ;;  %v2628_v1 = vld [vmem:[%s3315_s21 + $0x150] sm:$0xff]  ;;  %v2645_v3 = vld [vmem:[%s3315_s21 + $0x1d8] sm:$0xff]  ;;  %v2654_v4 = vld [vmem:[%s3315_s21 + $0x220] sm:$0xff] }
  0x99   : > { %502 = vmatpush.bf16.msra.mxu0 %v2588_v11  ;;  %949 = vmatpush.bf16.msra.mxu3 %v2612_v12  ;;  %v2636_v2 = vld [vmem:[%s3315_s21 + $0x190] sm:$0xff]  ;;  %v2627_v5 = vld [vmem:[%s3315_s21 + $0x148] sm:$0xff]  ;;  %v2653_v8 = vld [vmem:[%s3315_s21 + $0x218] sm:$0xff] }
  0x9a   : > { %v2635_v6 = vld [vmem:[%s3315_s21 + $0x188] sm:$0xff]  ;;  %v2644_v7 = vld [vmem:[%s3315_s21 + $0x1d0] sm:$0xff]  ;;  %v2626_v10 = vld [vmem:[%s3315_s21 + $0x140] sm:$0xff] }
  0x9b   : > { %v2643_v9 = vld [vmem:[%s3315_s21 + $0x1c8] sm:$0xff]  ;;  %v2634_v11 = vld [vmem:[%s3315_s21 + $0x180] sm:$0xff] }
  0x9c   : > { %2670 = vmatpush.bf16.msra.mxu1 %v2587_v13  ;;  %2671 = vmatpush.bf16.msra.mxu2 %v2587_v13  ;;  %v2642_v12 = vld [vmem:[%s3315_s21 + $0x1c0] sm:$0xff]  ;;  %v2651_v14 = vld [vmem:[%s3315_s21 + $0x208] sm:$0xff] }
  0x9d   : > { %503 = vmatpush.bf16.msra.mxu0 %v2587_v13  ;;  %950 = vmatpush.bf16.msra.mxu3 %v2611_v15  ;;  %v2652_v13 = vld [vmem:[%s3315_s21 + $0x210] sm:$0xff]  ;;  %v2650_v15 = vld [vmem:[%s3315_s21 + $0x200] sm:$0xff] }
  0xa0   : > { %2672 = vmatpush.bf16.msra.mxu1 %v2586_v17  ;;  %2673 = vmatpush.bf16.msra.mxu2 %v2586_v17 }
  0xa1   : > { %504 = vmatpush.bf16.msra.mxu0 %v2586_v17  ;;  %951 = vmatpush.bf16.msra.mxu3 %v2610_v20 }
  0xa3   : > { %515 = vmatmul.bf16.vlgmr.msra.gmra.mxu1 %v3359_v21  ;;  %525 = vmatmul.bf16.vlgmr.msra.gmra.mxu2 %v3361_v22 }
  0xa4   : > { %783 = vmatpush.bf16.msrb.mxu2 %v2609_v18  ;;  %622 = vmatpush.bf16.msrb.mxu1 %v2601_v19  ;;  %v538_v18 = vld [vmem:[#allocation2 + $0x8] sm:$0xff] }
  0xa5   : > { %1105 = vmatpush.bf16.msrb.mxu0 %v2625_v23  ;;  %952 = vmatmul.bf16.vlgmr.msra.gmra.mxu3 %v3367_v26 }
  0xa6   : > { %505 = vmatmul.bf16.vlgmr.msra.gmra.mxu0 %v3367_v26  ;;  %1540 = vmatpush.bf16.msrb.mxu3 %v2649_v30 }
  0xa8   : > { %784 = vmatpush.bf16.msrb.mxu2 %v2608_v24  ;;  %623 = vmatpush.bf16.msrb.mxu1 %v2600_v25 }
  0xa9   : > { %1106 = vmatpush.bf16.msrb.mxu0 %v2624_v27 }
  0xaa   : > { %1541 = vmatpush.bf16.msrb.mxu3 %v2648_v42 }
  0xac   : > { %785 = vmatpush.bf16.msrb.mxu2 %v2607_v28  ;;  %624 = vmatpush.bf16.msrb.mxu1 %v2599_v29 }
  0xad   : > { %1107 = vmatpush.bf16.msrb.mxu0 %v2623_v31 }
  0xae   : > { %1542 = vmatpush.bf16.msrb.mxu3 %v2647_v55 }
  0xb0   : > { %786 = vmatpush.bf16.msrb.mxu2 %v2606_v32  ;;  %625 = vmatpush.bf16.msrb.mxu1 %v2598_v33 }
  0xb1   : > { %1108 = vmatpush.bf16.msrb.mxu0 %v2622_v34 }
  0xb2   : > { %1543 = vmatpush.bf16.msrb.mxu3 %v2646_v60 }
  0xb3   : > { %520 = vmatmul.bf16.gmra.mxu1 %v3384_v37 }
  0xb4   : > { %787 = vmatpush.bf16.msrb.mxu2 %v2605_v35  ;;  %626 = vmatpush.bf16.msrb.mxu1 %v2597_v36 }
  0xb5   : > { %1109 = vmatpush.bf16.msrb.mxu0 %v2621_v38  ;;  %957 = vmatmul.bf16.gmra.mxu3 %v3390_v41 }
  0xb6   : > { %510 = vmatmul.bf16.gmra.mxu0 %v3390_v41  ;;  %1544 = vmatpush.bf16.msrb.mxu3 %v2645_v3 }
  0xb8   : > { %788 = vmatpush.bf16.msrb.mxu2 %v2604_v39  ;;  %627 = vmatpush.bf16.msrb.mxu1 %v2596_v40 }
  0xb9   : > { %1110 = vmatpush.bf16.msrb.mxu0 %v2620_v43 }
  0xba   : > { %1545 = vmatpush.bf16.msrb.mxu3 %v2644_v7 }
  0xbc   : > { %789 = vmatpush.bf16.msrb.mxu2 %v2603_v44  ;;  %628 = vmatpush.bf16.msrb.mxu1 %v2595_v45  ;;  %v530_v44 = vld [vmem:[#allocation2 + $0x30] sm:$0xff] }
  0xbd   : > { %1111 = vmatpush.bf16.msrb.mxu0 %v2619_v46 }
  0xbe   : > { %1546 = vmatpush.bf16.msrb.mxu3 %v2643_v9 }
  0xc0   : > { %790 = vmatpush.bf16.msrb.mxu2 %v2602_v47  ;;  %629 = vmatpush.bf16.msrb.mxu1 %v2594_v48 }
  0xc1   : > { %1112 = vmatpush.bf16.msrb.mxu0 %v2618_v51 }
  0xc2   : > { %1547 = vmatpush.bf16.msrb.mxu3 %v2642_v12 }
  0xc3   : > { %791 = vmatmul.bf16.vlgmr.msrb.gmra.mxu2 %v3367_v26  ;;  %630 = vmatmul.bf16.vlgmr.msrb.gmra.mxu1 %v3367_v26 }
  0xc4   : > { %1266 = vmatpush.bf16.msra.mxu1 %v2633_v49  ;;  %1387 = vmatpush.bf16.msra.mxu2 %v2641_v50 }
  0xc5   : > { %1693 = vmatpush.bf16.msra.mxu0 %v2657_v52  ;;  %962 = vmatmul.bf16.gmra.mxu3 %v3359_v21 }
  0xc6   : > { %1113 = vmatmul.bf16.vlgmr.msrb.gmra.mxu0 %v3367_v26 }
  0xc8   : > { %1267 = vmatpush.bf16.msra.mxu1 %v2632_v53  ;;  %1388 = vmatpush.bf16.msra.mxu2 %v2640_v54 }
  0xc9   : > { %1694 = vmatpush.bf16.msra.mxu0 %v2656_v58 }
  0xcc   : > { %1268 = vmatpush.bf16.msra.mxu1 %v2631_v56  ;;  %1389 = vmatpush.bf16.msra.mxu2 %v2639_v57 }
  0xcd   : > { %1695 = vmatpush.bf16.msra.mxu0 %v2655_v0 }
  0xd0   : > { %1269 = vmatpush.bf16.msra.mxu1 %v2630_v59  ;;  %1390 = vmatpush.bf16.msra.mxu2 %v2638_v61  ;;  %v531_v61 = vld [vmem:[#allocation2] sm:$0xff] }
  0xd1   : > { %1696 = vmatpush.bf16.msra.mxu0 %v2654_v4 }
  0xd3   : > { %796 = vmatmul.bf16.gmra.mxu2 %v3390_v41  ;;  %635 = vmatmul.bf16.gmra.mxu1 %v3390_v41 }
  0xd4   : > { %1270 = vmatpush.bf16.msra.mxu1 %v2629_v62  ;;  %1391 = vmatpush.bf16.msra.mxu2 %v2637_v63 }
  0xd5   : > { %967 = vmatmul.bf16.gmra.mxu3 %v3384_v37  ;;  %1697 = vmatpush.bf16.msra.mxu0 %v2653_v8 }
  0xd6   : > { %1118 = vmatmul.bf16.gmra.mxu0 %v3390_v41 }
  0xd8   : > { %1271 = vmatpush.bf16.msra.mxu1 %v2628_v1  ;;  %1392 = vmatpush.bf16.msra.mxu2 %v2636_v2 }
  0xd9   : > { %1698 = vmatpush.bf16.msra.mxu0 %v2652_v13 }
  0xdc   : > { %1272 = vmatpush.bf16.msra.mxu1 %v2627_v5  ;;  %1393 = vmatpush.bf16.msra.mxu2 %v2635_v6 }
  0xdd   : > { %1699 = vmatpush.bf16.msra.mxu0 %v2651_v14 }
  0xe0   : > { %1273 = vmatpush.bf16.msra.mxu1 %v2626_v10  ;;  %1394 = vmatpush.bf16.msra.mxu2 %v2634_v11 }
  0xe1   : > { %1700 = vmatpush.bf16.msra.mxu0 %v2650_v15  ;;  %v532_v15 = vld [vmem:[#allocation2 + $0x18] sm:$0xff] }
  0xe3   : > { %801 = vmatmul.bf16.gmra.mxu2 %v3359_v21  ;;  %640 = vmatmul.bf16.gmra.mxu1 %v3359_v21 }
  0xe5   : > { %972 = vmatmul.bf16.gmra.mxu3 %v3361_v22 }
  0xe6   : > { %1123 = vmatmul.bf16.gmra.mxu0 %v3359_v21 }
  0xf3   : > { %806 = vmatmul.bf16.gmra.mxu2 %v3384_v37  ;;  %645 = vmatmul.bf16.gmra.mxu1 %v3384_v37 }
  0xf5   : > { %1548 = vmatmul.bf16.vlgmr.msrb.gmra.mxu3 %v3367_v26 }
  0xf6   : > { %1128 = vmatmul.bf16.gmra.mxu0 %v3384_v37 }
 0x103   : > { %811 = vmatmul.bf16.gmra.mxu2 %v3361_v22  ;;  %650 = vmatmul.bf16.gmra.mxu1 %v3361_v22 }
 0x105   : > { %1552 = vmatmul.bf16.gmra.mxu3 %v3390_v41 }
 0x106   : > { %1133 = vmatmul.bf16.gmra.mxu0 %v3361_v22 }
 0x113   : > { %1395 = vmatmul.bf16.vlgmr.msra.gmra.mxu2 %v3367_v26  ;;  %1274 = vmatmul.bf16.vlgmr.msra.gmra.mxu1 %v3367_v26 }
 0x115   : > { %1557 = vmatmul.bf16.gmra.mxu3 %v3359_v21 }
 0x116   : > { %1701 = vmatmul.bf16.vlgmr.msra.gmra.mxu0 %v3367_v26 }
 0x120   : > { %v3457_v16 = vpop.f32.mrf.mxu1 }
 0x123   : > { %1399 = vmatmul.bf16.gmra.mxu2 %v3390_v41  ;;  %1278 = vmatmul.bf16.gmra.mxu1 %v3390_v41  ;;  %v506_v17 = vpop.f32.mrf.mxu0 }
 0x124   : > { %v539_v48 = vadd.f32 %v530_v44, %v506_v17 }
 0x125   : > { %1562 = vmatmul.bf16.gmra.mxu3 %v3384_v37 }
 0x126   : > { %1705 = vmatmul.bf16.gmra.mxu0 %v3390_v41  ;;  %v526_v19 = vpop.f32.mrf.mxu2 }
 0x127   : > { %v547_v20 = vadd.f32 %v538_v18, %v526_v19 }
 0x128   : > { %v3463_v23 = vpop.f32.mrf.mxu1  ;;  %v953_v24 = vpop.f32.mrf.mxu3 }
 0x129   : > { %556 = vst [vmem:[#allocation2 + $0x8] sm:$0xff] %v547_v20  ;;  %v996_v28 = vrot.slane %v953_v24, 6 }
 0x12b   : > { %v508_v25 = vpop.f32.mrf.mxu0 }
 0x12c   : > { %v540_v2 = vadd.f32 %v531_v61, %v508_v25 }
 0x12e   : > { %v528_v26 = vpop.f32.mrf.mxu2 }
 0x130   : > { %v3465_v27 = vpop.f32.mrf.mxu1  ;;  %v955_v29 = vpop.f32.mrf.mxu3 }
 0x131   : > { %v997_v30 = vrot.slane %v955_v29, 6 }
 0x133   : > { %1404 = vmatmul.bf16.gmra.mxu2 %v3359_v21  ;;  %1283 = vmatmul.bf16.gmra.mxu1 %v3359_v21  ;;  %v3469_v31 = vpop.f32.mrf.mxu0  ;;  %v998_v32 = vsel %vm995_vm0, %v996_v28, %v997_v30 }
 0x134   : > { %v541_v24 = vadd.f32 %v532_v15, %v3469_v31 }
 0x135   : > { %1567 = vmatmul.bf16.gmra.mxu3 %v3361_v22 }
 0x136   : > { %1710 = vmatmul.bf16.gmra.mxu0 %v3359_v21 }
 0x138   : > { %v3474_v33 = vpop.f32.mrf.mxu1  ;;  %v958_v34 = vpop.f32.mrf.mxu3 }
 0x139   : > { %v999_v35 = vrot.slane %v958_v34, 6 }
 0x13b   : > { %v3476_v36 = vpop.f32.mrf.mxu0  ;;  %v1000_v38 = vsel %vm995_vm0, %v997_v30, %v999_v35 }
 0x140   : > { %v631_v39 = vpop.f32.mrf.mxu1  ;;  %v960_v40 = vpop.f32.mrf.mxu3 }
 0x141   : > { %v1001_v41 = vrot.slane %v960_v40, 6  ;;  %v674_v46 = vrot.slane %v631_v39, 1 }
 0x143   : > { %1409 = vmatmul.bf16.gmra.mxu2 %v3384_v37  ;;  %1288 = vmatmul.bf16.gmra.mxu1 %v3384_v37  ;;  %v1114_v43 = vpop.f32.mrf.mxu0  ;;  %v3482_v21 = vsel %vm995_vm0, %v999_v35, %v1001_v41 }
 0x144   : > { %v1157_v49 = vrot.slane %v1114_v43, 7 }
 0x146   : > { %v792_v42 = vpop.f32.mrf.mxu2  ;;  %1715 = vmatmul.bf16.gmra.mxu0 %v3384_v37 }
 0x147   : > { %v835_v55 = vrot.slane %v792_v42, 2 }
 0x148   : > { %v633_v45 = vpop.f32.mrf.mxu1  ;;  %v963_v50 = vpop.f32.mrf.mxu3 }
 0x149   : > { %v675_v47 = vrot.slane %v633_v45, 1  ;;  %v1003_v54 = vrot.slane %v963_v50, 6 }
 0x14b   : > { %v676_v51 = vsel %vm673_vm1, %v674_v46, %v675_v47  ;;  %v1116_v53 = vpop.f32.mrf.mxu0  ;;  %v3487_v37 = vsel %vm995_vm0, %v1001_v41, %v1003_v54  ;;  %v533_v41 = vld [vmem:[#allocation2 + $0x10] sm:$0xff] }
 0x14c   : > { %v700_v56 = vadd.f32 %v676_v51, %v539_v48  ;;  %v1158_v58 = vrot.slane %v1116_v53, 7  ;;  %v542_v45 = vadd.f32 %v533_v41, %v3476_v36 }
 0x14e   : > { %v794_v52 = vpop.f32.mrf.mxu2  ;;  %v1159_v60 = vsel %vm1156_vm3, %v1157_v49, %v1158_v58 }
 0x14f   : > { %v836_v57 = vrot.slane %v794_v52, 2 }
 0x150   : > { %v636_v63 = vpop.f32.mrf.mxu1  ;;  %v965_v3 = vpop.f32.mrf.mxu3 }
 0x151   : > { %v837_v59 = vsel %vm834_vm2, %v835_v55, %v836_v57  ;;  %v677_v1 = vrot.slane %v636_v63, 1  ;;  %v1005_v8 = vrot.slane %v965_v3, 6 }
 0x152   : > { %v861_v62 = vadd.f32 %v837_v59, %v700_v56  ;;  %v534_v56 = vld [vmem:[#allocation2 + $0x20] sm:$0xff] }
 0x153   : > { %1414 = vmatmul.bf16.gmra.mxu2 %v3361_v22  ;;  %v678_v4 = vsel %vm673_vm1, %v675_v47, %v677_v1  ;;  %1293 = vmatmul.bf16.gmra.mxu1 %v3361_v22  ;;  %v1119_v7 = vpop.f32.mrf.mxu0  ;;  %v1006_v12 = vsel %vm995_vm0, %v1003_v54, %v1005_v8  ;;  %v543_v61 = vadd.f32 %v534_v56, %v3457_v16 }
 0x154   : > { %v1022_v0 = vadd.f32 %v998_v32, %v861_v62  ;;  %v701_v9 = vadd.f32 %v678_v4, %v540_v2  ;;  %v1160_v11 = vrot.slane %v1119_v7, 7 }
 0x156   : > { %v3493_v5 = vadd.f32 %v1159_v60, %v1022_v0  ;;  %v797_v6 = vpop.f32.mrf.mxu2  ;;  %v1161_v14 = vsel %vm1156_vm3, %v1158_v58, %v1160_v11  ;;  %1720 = vmatmul.bf16.gmra.mxu0 %v3361_v22 }
 0x157   : > { %v838_v10 = vrot.slane %v797_v6, 2 }
 0x158   : > { %v638_v18 = vpop.f32.mrf.mxu1  ;;  %v968_v25 = vpop.f32.mrf.mxu3 }
 0x159   : > { %v839_v13 = vsel %vm834_vm2, %v836_v57, %v838_v10  ;;  %v679_v20 = vrot.slane %v638_v18, 1  ;;  %v1007_v32 = vrot.slane %v968_v25, 6 }
 0x15a   : > { %v862_v17 = vadd.f32 %v839_v13, %v701_v9  ;;  %v535_v9 = vld [vmem:[#allocation2 + $0x28] sm:$0xff] }
 0x15b   : > { %v680_v26 = vsel %vm673_vm1, %v677_v1, %v679_v20  ;;  %v1121_v30 = vpop.f32.mrf.mxu0  ;;  %v1008_v22 = vsel %vm995_vm0, %v1005_v8, %v1007_v32  ;;  %v544_v13 = vadd.f32 %v535_v9, %v3463_v23 }
 0x15c   : > { %v1023_v19 = vadd.f32 %v1000_v38, %v862_v17  ;;  %v702_v34 = vadd.f32 %v680_v26, %v541_v24  ;;  %v1162_v39 = vrot.slane %v1121_v30, 7  ;;  %v536_v30 = vld [vmem:[#allocation2 + $0x40] sm:$0xff] }
 0x15d   : > { %v545_v23 = vadd.f32 %v536_v30, %v3465_v27 }
 0x15e   : > { %v3502_v28 = vadd.f32 %v1161_v14, %v1023_v19  ;;  %v799_v29 = vpop.f32.mrf.mxu2  ;;  %v1163_v38 = vsel %vm1156_vm3, %v1160_v11, %v1162_v39 }
 0x15f   : > { %v840_v35 = vrot.slane %v799_v29, 2 }
 0x160   : > { %v641_v31 = vpop.f32.mrf.mxu1  ;;  %v3509_v46 = vpop.f32.mrf.mxu3 }
 0x161   : > { %v841_v40 = vsel %vm834_vm2, %v838_v10, %v840_v35  ;;  %v681_v44 = vrot.slane %v641_v31, 1  ;;  %v1009_v51 = vrot.slane %v3509_v46, 6 }
 0x162   : > { %v863_v42 = vadd.f32 %v841_v40, %v702_v34 }
 0x163   : > { %v682_v47 = vsel %vm673_vm1, %v679_v20, %v681_v44  ;;  %v1124_v50 = vpop.f32.mrf.mxu0 }
 0x164   : > { %v1024_v43 = vadd.f32 %v3482_v21, %v863_v42  ;;  %v703_v52 = vadd.f32 %v682_v47, %v542_v45  ;;  %v1164_v54 = vrot.slane %v1124_v50, 7  ;;  %v1010_v21 = vsel %vm995_vm0, %v1007_v32, %v1009_v51 }
 0x166   : > { %v3512_v48 = vadd.f32 %v1163_v38, %v1024_v43  ;;  %v802_v49 = vpop.f32.mrf.mxu2  ;;  %v1165_v36 = vsel %vm1156_vm3, %v1162_v39, %v1164_v54 }
 0x167   : > { %v842_v53 = vrot.slane %v802_v49, 2  ;;  %v537_v49 = vld [vmem:[#allocation2 + $0x38] sm:$0xff] }
 0x168   : > { %v643_v58 = vpop.f32.mrf.mxu1  ;;  %v3522_v62 = vpop.f32.mrf.mxu3  ;;  %v546_v27 = vadd.f32 %v537_v49, %v3474_v33 }
 0x169   : > { %v843_v55 = vsel %vm834_vm2, %v840_v35, %v842_v53  ;;  %v683_v60 = vrot.slane %v643_v58, 1 }
 0x16a   : > { %v864_v57 = vadd.f32 %v843_v55, %v703_v52 }
 0x16b   : > { %v684_v63 = vsel %vm673_vm1, %v681_v44, %v683_v60  ;;  %v1126_v2 = vpop.f32.mrf.mxu0 }
 0x16c   : > { %v1025_v59 = vadd.f32 %v3487_v37, %v864_v57  ;;  %v704_v3 = vadd.f32 %v684_v63, %v543_v61  ;;  %v1166_v6 = vrot.slane %v1126_v2, 7  ;;  %v1011_v61 = vrot.slane %v3522_v62, 6 }
 0x16e   : > { %v3525_v0 = vadd.f32 %v1165_v36, %v1025_v59  ;;  %v804_v1 = vpop.f32.mrf.mxu2  ;;  %v1167_v8 = vsel %vm1156_vm3, %v1164_v54, %v1166_v6  ;;  %v663_v54 = vld [vmem:[#allocation2 + $0x8] sm:$0x7f]  ;;  %v1012_v33 = vsel %vm995_vm0, %v1009_v51, %v1011_v61 }
 0x16f   : > { %v844_v4 = vrot.slane %v804_v1, 2 }
 0x170   : > { %v646_v10 = vpop.f32.mrf.mxu1  ;;  %v975_v14 = vpop.f32.mrf.mxu3 }
 0x171   : > { %v845_v7 = vsel %vm834_vm2, %v842_v53, %v844_v4  ;;  %v685_v16 = vrot.slane %v646_v10, 1 }
 0x172   : > { %v865_v37 = vadd.f32 %v845_v7, %v704_v3 }
 0x173   : > { %v686_v15 = vsel %vm673_vm1, %v683_v60, %v685_v16  ;;  %v1129_v19 = vpop.f32.mrf.mxu0 }
 0x174   : > { %v1026_v11 = vadd.f32 %v1006_v12, %v865_v37  ;;  %v705_v20 = vadd.f32 %v686_v15, %v544_v13  ;;  %v1168_v25 = vrot.slane %v1129_v19, 7 }
 0x176   : > { %v3531_v17 = vadd.f32 %v1167_v8, %v1026_v11  ;;  %v807_v18 = vpop.f32.mrf.mxu2  ;;  %v1169_v29 = vsel %vm1156_vm3, %v1166_v6, %v1168_v25 }
 0x177   : > { %v846_v24 = vrot.slane %v807_v18, 2 }
 0x178   : > { %v648_v12 = vpop.f32.mrf.mxu1  ;;  %v1549_v39 = vpop.f32.mrf.mxu3 }
 0x179   : > { %v847_v26 = vsel %vm834_vm2, %v844_v4, %v846_v24  ;;  %v687_v35 = vrot.slane %v648_v12, 1 }
 0x17a   : > { %v866_v32 = vadd.f32 %v847_v26, %v705_v20 }
 0x17b   : > { %v688_v40 = vsel %vm673_vm1, %v685_v16, %v687_v35  ;;  %v1131_v42 = vpop.f32.mrf.mxu0 }
 0x17c   : > { %v1027_v34 = vadd.f32 %v1008_v22, %v866_v32  ;;  %v706_v31 = vadd.f32 %v688_v40, %v545_v23  ;;  %v1170_v44 = vrot.slane %v1131_v42, 7 }
 0x17e   : > { %v3537_v38 = vadd.f32 %v1169_v29, %v1027_v34  ;;  %v809_v41 = vpop.f32.mrf.mxu2  ;;  %v1171_v47 = vsel %vm1156_vm3, %v1168_v25, %v1170_v44 }
 0x17f   : > { %v848_v43 = vrot.slane %v809_v41, 2 }
 0x180   : > { %v651_v22 = vpop.f32.mrf.mxu1  ;;  %v1550_v55 = vpop.f32.mrf.mxu3 }
 0x181   : > { %v849_v45 = vsel %vm834_vm2, %v846_v24, %v848_v43  ;;  %v689_v53 = vrot.slane %v651_v22, 1  ;;  %v1589_v30 = vrot.slane %v1550_v55, 5 }
 0x182   : > { %v867_v50 = vadd.f32 %v849_v45, %v706_v31 }
 0x183   : > { %v690_v36 = vsel %vm673_vm1, %v687_v35, %v689_v53  ;;  %v708_v56 = vadd.f32 %v689_v53, %v663_v54  ;;  %v1134_v59 = vpop.f32.mrf.mxu0 }
 0x184   : > { %v1028_v52 = vadd.f32 %v1010_v21, %v867_v50  ;;  %v707_v60 = vadd.f32 %v690_v36, %v546_v27  ;;  %v1172_v1 = vrot.slane %v1134_v59, 7 }
 0x185   : > { %717 = vst [vmem:[#allocation2 + $0x8] sm:$0x7f] %v708_v56 }
 0x186   : > { %v3543_v57 = vadd.f32 %v1171_v47, %v1028_v52  ;;  %v812_v58 = vpop.f32.mrf.mxu2  ;;  %v1173_v4 = vsel %vm1156_vm3, %v1170_v44, %v1172_v1 }
 0x187   : > { %v850_v63 = vrot.slane %v812_v58, 2 }
 0x188   : > { %v653_v3 = vpop.f32.mrf.mxu1  ;;  %v1553_v7 = vpop.f32.mrf.mxu3 }
 0x189   : > { %v851_v21 = vsel %vm834_vm2, %v848_v43, %v850_v63  ;;  %v1590_v32 = vrot.slane %v1553_v7, 5 }
 0x18a   : > { %v868_v2 = vadd.f32 %v851_v21, %v707_v60 }
 0x18b   : > { %v1136_v37 = vpop.f32.mrf.mxu0  ;;  %v1591_v43 = vsel %vm1588_vm5, %v1589_v30, %v1590_v32 }
 0x18c   : > { %v1029_v6 = vadd.f32 %v1012_v33, %v868_v2  ;;  %v824_v62 = vld [vmem:[#allocation2 + $0x8] sm:$0x3f] }
 0x18d   : > { %v869_v10 = vadd.f32 %v850_v63, %v824_v62 }
 0x18e   : > { %v3551_v8 = vadd.f32 %v1173_v4, %v1029_v6  ;;  %v814_v9 = vpop.f32.mrf.mxu2 }
 0x18f   : > { %878 = vst [vmem:[#allocation2 + $0x8] sm:$0x3f] %v869_v10 }
 0x190   : > { %v1275_v11 = vpop.f32.mrf.mxu1  ;;  %v1555_v16 = vpop.f32.mrf.mxu3 }
 0x191   : > { %v1592_v49 = vrot.slane %v1555_v16, 5 }
 0x193   : > { %v1702_v14 = vpop.f32.mrf.mxu0  ;;  %v1593_v55 = vsel %vm1588_vm5, %v1590_v32, %v1592_v49 }
 0x196   : > { %v1396_v13 = vpop.f32.mrf.mxu2  ;;  %v985_v15 = vld [vmem:[#allocation2 + $0x8] sm:$0x3] }
 0x197   : > { %v1030_v46 = vadd.f32 %v1011_v61, %v985_v15 }
 0x198   : > { %v1276_v18 = vpop.f32.mrf.mxu1  ;;  %v3553_v51 = vpop.f32.mrf.mxu3 }
 0x199   : > { %1039 = vst [vmem:[#allocation2 + $0x8] sm:$0x3] %v1030_v46  ;;  %v1306_v41 = vadd.f32 %v1276_v18, %v3493_v5  ;;  %v1594_v2 = vrot.slane %v3553_v51, 5 }
 0x19b   : > { %v1703_v20 = vpop.f32.mrf.mxu0  ;;  %v1595_v7 = vsel %vm1588_vm5, %v1592_v49, %v1594_v2 }
 0x19c   : > { %v1741_v23 = vrot.slane %v1703_v20, 6 }
 0x19e   : > { %v1397_v19 = vpop.f32.mrf.mxu2 }
 0x19f   : > { %v1436_v35 = vrot.slane %v1397_v19, 4 }
 0x1a0   : > { %v1146_v24 = vld [vmem:[#allocation2 + $0x8] sm:$0x1]  ;;  %v1279_v25 = vpop.f32.mrf.mxu1  ;;  %v3555_v29 = vpop.f32.mrf.mxu3 }
 0x1a1   : > { %v1191_v26 = vadd.f32 %v1172_v1, %v1146_v24  ;;  %v1307_v5 = vadd.f32 %v1279_v25, %v3502_v28  ;;  %v1596_v10 = vrot.slane %v3555_v29, 5 }
 0x1a3   : > { %1200 = vst [vmem:[#allocation2 + $0x8] sm:$0x1] %v1191_v26  ;;  %v1706_v34 = vpop.f32.mrf.mxu0  ;;  %v1597_v18 = vsel %vm1588_vm5, %v1594_v2, %v1596_v10 }
 0x1a4   : > { %v1742_v40 = vrot.slane %v1706_v34, 6 }
 0x1a6   : > { %v1400_v12 = vpop.f32.mrf.mxu2  ;;  %v1743_v45 = vsel %vm995_vm0, %v1741_v23, %v1742_v40 }
 0x1a7   : > { %v1437_v39 = vrot.slane %v1400_v12, 4 }
 0x1a8   : > { %v1281_v44 = vpop.f32.mrf.mxu1  ;;  %v3561_v50 = vpop.f32.mrf.mxu3 }
 0x1a9   : > { %v1438_v42 = vsel %vm1435_vm4, %v1436_v35, %v1437_v39  ;;  %v1308_v28 = vadd.f32 %v1281_v44, %v3512_v48  ;;  %v1598_v12 = vrot.slane %v3561_v50, 5 }
 0x1aa   : > { %v1459_v31 = vadd.f32 %v1438_v42, %v1306_v41 }
 0x1ab   : > { %v1708_v53 = vpop.f32.mrf.mxu0 }
 0x1ac   : > { %v1612_v47 = vadd.f32 %v1591_v43, %v1459_v31  ;;  %v1744_v54 = vrot.slane %v1708_v53, 6 }
 0x1ae   : > { %v1764_v22 = vadd.f32 %v1743_v45, %v1612_v47  ;;  %v1402_v52 = vpop.f32.mrf.mxu2  ;;  %v1745_v59 = vsel %vm995_vm0, %v1742_v40, %v1744_v54  ;;  %v1599_v40 = vsel %vm1588_vm5, %v1596_v10, %v1598_v12 }
 0x1af   : > { %v1439_v27 = vrot.slane %v1402_v52, 4 }
 0x1b0   : > { %1772 = vst [vmem:[#allocation2 + $0x30] sm:$0xff] %v1764_v22  ;;  %v1284_v58 = vpop.f32.mrf.mxu1  ;;  %v3567_v61 = vpop.f32.mrf.mxu3 }
 0x1b1   : > { %v1440_v36 = vsel %vm1435_vm4, %v1437_v39, %v1439_v27  ;;  %v1309_v48 = vadd.f32 %v1284_v58, %v3525_v0  ;;  %v1600_v43 = vrot.slane %v3567_v61, 5 }
 0x1b2   : > { %v1460_v56 = vadd.f32 %v1440_v36, %v1307_v5 }
 0x1b3   : > { %v1711_v21 = vpop.f32.mrf.mxu0 }
 0x1b4   : > { %v1613_v60 = vadd.f32 %v1593_v55, %v1460_v56  ;;  %v1746_v3 = vrot.slane %v1711_v21, 6 }
 0x1b6   : > { %v1765_v63 = vadd.f32 %v1745_v59, %v1613_v60  ;;  %v1405_v1 = vpop.f32.mrf.mxu2  ;;  %v1747_v37 = vsel %vm995_vm0, %v1744_v54, %v1746_v3 }
 0x1b7   : > { %v1441_v33 = vrot.slane %v1405_v1, 4 }
 0x1b8   : > { %1773 = vst [vmem:[#allocation2] sm:$0xff] %v1765_v63  ;;  %v1286_v9 = vpop.f32.mrf.mxu1  ;;  %v3575_v11 = vpop.f32.mrf.mxu3 }
 0x1b9   : > { %v1442_v4 = vsel %vm1435_vm4, %v1439_v27, %v1441_v33  ;;  %v1310_v0 = vadd.f32 %v1286_v9, %v3531_v17  ;;  %v1601_v17 = vsel %vm1588_vm5, %v1598_v12, %v1600_v43  ;;  %v1602_v59 = vrot.slane %v3575_v11, 5 }
 0x1ba   : > { %v1461_v6 = vadd.f32 %v1442_v4, %v1308_v28 }
 0x1bb   : > { %v1713_v14 = vpop.f32.mrf.mxu0  ;;  %v1603_v21 = vsel %vm1588_vm5, %v1600_v43, %v1602_v59 }
 0x1bc   : > { %v1614_v62 = vadd.f32 %v1595_v7, %v1461_v6  ;;  %v1748_v46 = vrot.slane %v1713_v14, 6 }
 0x1be   : > { %v1766_v16 = vadd.f32 %v1747_v37, %v1614_v62  ;;  %v1407_v13 = vpop.f32.mrf.mxu2  ;;  %v1749_v24 = vsel %vm995_vm0, %v1746_v3, %v1748_v46 }
 0x1bf   : > { %v1443_v15 = vrot.slane %v1407_v13, 4 }
 0x1c0   : > { %1774 = vst [vmem:[#allocation2 + $0x18] sm:$0xff] %v1766_v16  ;;  %v1289_v20 = vpop.f32.mrf.mxu1  ;;  %v1570_v26 = vpop.f32.mrf.mxu3 }
 0x1c1   : > { %v1444_v51 = vsel %vm1435_vm4, %v1441_v33, %v1443_v15  ;;  %v1311_v22 = vadd.f32 %v1289_v20, %v3537_v38 }
 0x1c2   : > { %v1462_v19 = vadd.f32 %v1444_v51, %v1309_v48 }
 0x1c3   : > { %v1716_v32 = vpop.f32.mrf.mxu0 }
 0x1c4   : > { %v1615_v25 = vadd.f32 %v1597_v18, %v1462_v19  ;;  %v1750_v35 = vrot.slane %v1716_v32, 6 }
 0x1c6   : > { %v1767_v29 = vadd.f32 %v1749_v24, %v1615_v25  ;;  %v1410_v30 = vpop.f32.mrf.mxu2  ;;  %v1751_v42 = vsel %vm995_vm0, %v1748_v46, %v1750_v35 }
 0x1c7   : > { %v1445_v34 = vrot.slane %v1410_v30, 4 }
 0x1c8   : > { %1775 = vst [vmem:[#allocation2 + $0x10] sm:$0xff] %v1767_v29  ;;  %v1291_v41 = vpop.f32.mrf.mxu1 }
 0x1c9   : > { %v1446_v23 = vsel %vm1435_vm4, %v1443_v15, %v1445_v34  ;;  %v1312_v61 = vadd.f32 %v1291_v41, %v3543_v57 }
 0x1ca   : > { %v1463_v39 = vadd.f32 %v1446_v23, %v1310_v0 }
 0x1cb   : > { %v1718_v47 = vpop.f32.mrf.mxu0 }
 0x1cc   : > { %v1616_v31 = vadd.f32 %v1599_v40, %v1463_v39  ;;  %v1752_v50 = vrot.slane %v1718_v47, 6 }
 0x1ce   : > { %v1768_v44 = vadd.f32 %v1751_v42, %v1616_v31  ;;  %v1412_v45 = vpop.f32.mrf.mxu2  ;;  %v1753_v54 = vsel %vm995_vm0, %v1750_v35, %v1752_v50 }
 0x1cf   : > { %v1447_v49 = vrot.slane %v1412_v45, 4 }
 0x1d0   : > { %1776 = vst [vmem:[#allocation2 + $0x20] sm:$0xff] %v1768_v44  ;;  %v1294_v27 = vpop.f32.mrf.mxu1 }
 0x1d1   : > { %v1448_v52 = vsel %vm1435_vm4, %v1445_v34, %v1447_v49  ;;  %v1313_v5 = vadd.f32 %v1294_v27, %v3551_v8 }
 0x1d2   : > { %v1464_v53 = vadd.f32 %v1448_v52, %v1311_v22 }
 0x1d3   : > { %1321 = vst [vmem:[#allocation2 + $0x38] sm:$0xff] %v1313_v5  ;;  %v1721_v58 = vpop.f32.mrf.mxu0 }
 0x1d4   : > { %v1617_v55 = vadd.f32 %v1601_v17, %v1464_v53  ;;  %v1754_v38 = vrot.slane %v1721_v58, 6 }
 0x1d6   : > { %v1769_v36 = vadd.f32 %v1753_v54, %v1617_v55  ;;  %v1415_v56 = vpop.f32.mrf.mxu2  ;;  %v1755_v8 = vsel %vm995_vm0, %v1752_v50, %v1754_v38 }
 0x1d7   : > { %v1449_v60 = vrot.slane %v1415_v56, 4 }
 0x1d8   : > { %1777 = vst [vmem:[#allocation2 + $0x28] sm:$0xff] %v1769_v36  ;;  %v1296_v2 = vpop.f32.mrf.mxu1 }
 0x1d9   : > { %v1450_v63 = vsel %vm1435_vm4, %v1447_v49, %v1449_v60 }
 0x1da   : > { %v1465_v1 = vadd.f32 %v1450_v63, %v1312_v61  ;;  %v1426_v3 = vld [vmem:[#allocation2 + $0x38] sm:$0xf] }
 0x1db   : > { %v1466_v28 = vadd.f32 %v1449_v60, %v1426_v3  ;;  %v1723_v7 = vpop.f32.mrf.mxu0 }
 0x1dc   : > { %v1618_v33 = vadd.f32 %v1603_v21, %v1465_v1 }
 0x1dd   : > { %1474 = vst [vmem:[#allocation2 + $0x38] sm:$0xf] %v1466_v28 }
 0x1de   : > { %v1770_v4 = vadd.f32 %v1755_v8, %v1618_v33  ;;  %v1417_v6 = vpop.f32.mrf.mxu2 }
 0x1e0   : > { %1778 = vst [vmem:[#allocation2 + $0x40] sm:$0xff] %v1770_v4 }
 0x1e4   : > { %v1579_v9 = vld [vmem:[#allocation2 + $0x38] sm:$0x7] }
 0x1e5   : > { %v1619_v37 = vadd.f32 %v1602_v59, %v1579_v9 }
 0x1e7   : > { %1627 = vst [vmem:[#allocation2 + $0x38] sm:$0x7] %v1619_v37 }
 0x1ed   : > { %1783 = sbr.rel (%p2576_p0) target bundleno = 557 (0x22d), region = 60 }
 0x1ee   : > { %v1732_v57 = vld [vmem:[#allocation2 + $0x38] sm:$0x3] }
 0x1ef   : > { %v1771_v62 = vadd.f32 %v1754_v38, %v1732_v57 }
 0x1f1   : > { %1779 = vst [vmem:[#allocation2 + $0x38] sm:$0x3] %v1771_v62 }
 0x1f2   : > { %v1784_v10 = vld [vmem:[#allocation2 + $0x30] sm:$0xff]  ;;  %v1785_v11 = vld [vmem:[#allocation2] sm:$0xff]  ;;  %v1786_v16 = vld [vmem:[#allocation2 + $0x18] sm:$0xff]  ;;  %vm1827_vm6 = vcmask 1043457   ;;  %vm1835_vm7 = vcmask 1047558   ;;  %vm1843_vm8 = vcmask 1047559  }
 0x1f3   : > { %v1787_v13 = vld [vmem:[#allocation2 + $0x20] sm:$0xff]  ;;  %v1788_v14 = vld [vmem:[#allocation2 + $0x28] sm:$0xff]  ;;  %vm1853_vm9 = vcmask 1045508   ;;  %vm1861_vm10 = vcmask 1047557   ;;  %vm1869_vm11 = vcmask 1043458   ;;  %vm1877_vm12 = vcmask 1045507  }
 0x1f4   : > { %v1789_v15 = vld [vmem:[#allocation2 + $0x40] sm:$0xff] }
 0x1f5   : > { %v2823_v48 = vld [vmem:[%s333_s11] ss:$0 sm:$0xff] }
 0x1f6   : > { %v2824_v18 = vld [vmem:[%s342_s7] ss:$0 sm:$0xff]  ;;  %v1795_v51 = vmul.f32 %v2823_v48, %v1784_v10  ;;  %v1796_v19 = vmul.f32 %v2823_v48, %v1785_v11  ;;  %v1797_v20 = vmul.f32 %v2823_v48, %v1786_v16  ;;  %v1798_v24 = vmul.f32 %v2823_v48, %v1787_v13 }
 0x1f7   : > { %v1799_v25 = vmul.f32 %v2823_v48, %v1788_v14  ;;  %v1800_v26 = vmul.f32 %v2823_v48, %v1789_v15 }
 0x1f8   : > { %v1790_v46 = vld [vmem:[#allocation2 + $0x38] sm:$0xff]  ;;  %v1806_v30 = vadd.f32 %v2824_v18, %v1795_v51  ;;  %v1807_v32 = vadd.f32 %v2824_v18, %v1796_v19  ;;  %v1808_v12 = vadd.f32 %v2824_v18, %v1797_v20  ;;  %v3602_v34 = vadd.f32 %v2824_v18, %v1798_v24 }
 0x1f9   : > { %v1801_v29 = vmul.f32 %v2823_v48, %v1790_v46  ;;  %v3604_v35 = vadd.f32 %v2824_v18, %v1799_v25  ;;  %v1811_v0 = vadd.f32 %v2824_v18, %v1800_v26 }
 0x1fa   : > { %v1813_v39 = vmax.f32 %v1806_v30, 0.0  ;;  %v1814_v40 = vmax.f32 %v1807_v32, 0.0  ;;  %v1815_v41 = vmax.f32 %v1808_v12, 0.0  ;;  %v1816_v42 = vmax.f32 %v3602_v34, 0.0 }
 0x1fb   : > { %v3606_v23 = vadd.f32 %v2824_v18, %v1801_v29  ;;  %v1817_v31 = vmax.f32 %v3604_v35, 0.0  ;;  %v3610_v43 = vmax.f32 %v1811_v0, 0.0 }
 0x1fc   : > { %v1820_v45 = vsel %vm995_vm0, %v1813_v39, -inf  ;;  %v1828_v47 = vsel %vm1827_vm6, %v1813_v39, -inf  ;;  %v1836_v49 = vsel %vm1835_vm7, %v1813_v39, -inf  ;;  %v1844_v50 = vsel %vm1843_vm8, %v1813_v39, -inf }
 0x1fd   : > { %v1819_v44 = vmax.f32 %v3606_v23, 0.0  ;;  %v1821_v22 = vrot.slane %v1820_v45, 4  ;;  %v1829_v17 = vrot.slane %v1828_v47, 4  ;;  %v1837_v52 = vrot.slane %v1836_v49, 4 }
 0x1fe   : > { %v1845_v53 = vsel %vm995_vm0, %v1814_v40, -inf  ;;  %v1854_v54 = vsel %vm1853_vm9, %v1814_v40, -inf  ;;  %v1862_v5 = vsel %vm1861_vm10, %v1814_v40, -inf  ;;  %v1870_v55 = vsel %vm1869_vm11, %v1815_v41, -inf }
 0x1ff   : > { %v1846_v27 = vmax.f32 %v1844_v50, %v1845_v53  ;;  %v1822_v36 = vmax.f32 %v1820_v45, %v1821_v22  ;;  %v1830_v56 = vmax.f32 %v1828_v47, %v1829_v17  ;;  %v1838_v58 = vmax.f32 %v1836_v49, %v1837_v52 }
 0x200   : > { %v1855_v59 = vrot.slane %v1854_v54, 4  ;;  %v1863_v38 = vrot.slane %v1862_v5, 4  ;;  %v1871_v61 = vrot.slane %v1870_v55, 4  ;;  %v1878_v63 = vsel %vm1877_vm12, %v1815_v41, -inf }
 0x201   : > { %v1847_v60 = vrot.slane %v1846_v27, 4  ;;  %v1823_v1 = vrot.slane %v1822_v36, 2  ;;  %v1831_v21 = vrot.slane %v1830_v56, 2  ;;  %v1839_v2 = vrot.slane %v1838_v58, 2 }
 0x202   : > { %v1856_v8 = vmax.f32 %v1854_v54, %v1855_v59  ;;  %v1864_v3 = vmax.f32 %v1862_v5, %v1863_v38  ;;  %v1872_v28 = vmax.f32 %v1870_v55, %v1871_v61  ;;  %v1879_v4 = vrot.slane %v1878_v63, 4 }
 0x203   : > { %v1848_v33 = vmax.f32 %v1846_v27, %v1847_v60  ;;  %v1824_v6 = vmax.f32 %v1822_v36, %v1823_v1  ;;  %v1832_v7 = vmax.f32 %v1830_v56, %v1831_v21  ;;  %v1840_v9 = vmax.f32 %v1838_v58, %v1839_v2 }
 0x204   : > { %v1857_v37 = vrot.slane %v1856_v8, 2  ;;  %v1865_v62 = vrot.slane %v1864_v3, 2  ;;  %v1873_v10 = vrot.slane %v1872_v28, 2  ;;  %v1880_v11 = vmax.f32 %v1878_v63, %v1879_v4 }
 0x205   : > { %v1849_v57 = vrot.slane %v1848_v33, 2  ;;  %v1825_v16 = vrot.slane %v1824_v6, 1  ;;  %v1833_v13 = vrot.slane %v1832_v7, 1  ;;  %v1841_v14 = vrot.slane %v1840_v9, 1 }
 0x206   : > { %v1858_v15 = vmax.f32 %v1856_v8, %v1857_v37  ;;  %v1866_v48 = vmax.f32 %v1864_v3, %v1865_v62  ;;  %v1874_v18 = vmax.f32 %v1872_v28, %v1873_v10  ;;  %v1881_v51 = vrot.slane %v1880_v11, 2 }
 0x207   : > { %v1850_v46 = vmax.f32 %v1848_v33, %v1849_v57  ;;  %v1826_v19 = vmax.f32 %v1824_v6, %v1825_v16  ;;  %v1834_v20 = vmax.f32 %v1832_v7, %v1833_v13  ;;  %v1842_v24 = vmax.f32 %v1840_v9, %v1841_v14 }
 0x208   : > { %v1859_v25 = vrot.slane %v1858_v15, 1  ;;  %v1867_v29 = vrot.slane %v1866_v48, 1  ;;  %v1875_v30 = vrot.slane %v1874_v18, 1  ;;  %v1882_v32 = vmax.f32 %v1880_v11, %v1881_v51 }
 0x209   : > { %v1851_v26 = vrot.slane %v1850_v46, 1  ;;  %v1885_v34 = vmax.f32 %v1826_v19, %v1842_v24  ;;  %v1896_v0 = vsel %vm1853_vm9, %v1816_v42, -inf  ;;  %v1903_v39 = vsel %vm1861_vm10, %v1816_v42, -inf }
 0x20a   : > { %v1860_v12 = vmax.f32 %v1858_v15, %v1859_v25  ;;  %v1868_v41 = vmax.f32 %v1866_v48, %v1867_v29  ;;  %v1876_v45 = vmax.f32 %v1874_v18, %v1875_v30  ;;  %v1883_v47 = vrot.slane %v1882_v32, 1 }
 0x20b   : > { %v1852_v40 = vmax.f32 %v1850_v46, %v1851_v26  ;;  %v1897_v50 = vrot.slane %v1896_v0, 4  ;;  %v1904_v22 = vrot.slane %v1903_v39, 4  ;;  %v1910_v17 = vsel %vm1869_vm11, %v1817_v31, -inf }
 0x20c   : > { %v1888_v49 = vmax.f32 %v1842_v24, %v1860_v12  ;;  %v1884_v52 = vmax.f32 %v1882_v32, %v1883_v47  ;;  %v1911_v54 = vrot.slane %v1910_v17, 4  ;;  %v1917_v42 = vsel %vm1877_vm12, %v1817_v31, -inf }
 0x20d   : > { %v1886_v53 = vmax.f32 %v1834_v20, %v1852_v40  ;;  %v1891_v27 = vmax.f32 %v1852_v40, %v1868_v41  ;;  %v1898_v55 = vmax.f32 %v1896_v0, %v1897_v50  ;;  %v1905_v36 = vmax.f32 %v1903_v39, %v1904_v22 }
 0x20e   : > { %v1889_v5 = vmax.f32 %v1888_v49, %v1876_v45  ;;  %v1912_v59 = vmax.f32 %v1910_v17, %v1911_v54  ;;  %v1918_v60 = vrot.slane %v1917_v42, 4  ;;  %v1924_v63 = vsel %vm995_vm0, %v3610_v43, -inf }
 0x20f   : > { %v1887_v56 = vadd.f32 %v1886_v53, %v1885_v34  ;;  %v1892_v58 = vmax.f32 %v1891_v27, %v1884_v52  ;;  %v1899_v38 = vrot.slane %v1898_v55, 2  ;;  %v1906_v61 = vrot.slane %v1905_v36, 2 }
 0x210   : > { %v1931_v1 = vsel %vm1827_vm6, %v3610_v43, -inf  ;;  %v1913_v2 = vrot.slane %v1912_v59, 2  ;;  %v1919_v8 = vmax.f32 %v1917_v42, %v1918_v60  ;;  %v1925_v33 = vrot.slane %v1924_v63, 4 }
 0x211   : > { %v1890_v21 = vadd.f32 %v1889_v5, %v1887_v56  ;;  %v1900_v3 = vmax.f32 %v1898_v55, %v1899_v38  ;;  %v1907_v35 = vmax.f32 %v1905_v36, %v1906_v61  ;;  %v1932_v28 = vrot.slane %v1931_v1, 4 }
 0x212   : > { %v1938_v31 = vsel %vm1835_vm7, %v3610_v43, -inf  ;;  %v1914_v6 = vmax.f32 %v1912_v59, %v1913_v2  ;;  %v1920_v7 = vrot.slane %v1919_v8, 2  ;;  %v1926_v9 = vmax.f32 %v1924_v63, %v1925_v33 }
 0x213   : > { %v1893_v4 = vadd.f32 %v1892_v58, %v1890_v21  ;;  %v1901_v37 = vrot.slane %v1900_v3, 1  ;;  %v1908_v57 = vrot.slane %v1907_v35, 1  ;;  %v1933_v62 = vmax.f32 %v1931_v1, %v1932_v28 }
 0x214   : > { %v1939_v10 = vrot.slane %v1938_v31, 4  ;;  %v1915_v16 = vrot.slane %v1914_v6, 1  ;;  %v1921_v13 = vmax.f32 %v1919_v8, %v1920_v7  ;;  %v1927_v14 = vrot.slane %v1926_v9, 2 }
 0x215   : > { %v1894_v11 = vmul.f32 0.25, %v1893_v4  ;;  %v1934_v15 = vrot.slane %v1933_v62, 2  ;;  %v1902_v48 = vmax.f32 %v1900_v3, %v1901_v37  ;;  %v1945_v19 = vsel %vm1843_vm8, %v3610_v43, -inf }
 0x216   : > { %v1940_v46 = vmax.f32 %v1938_v31, %v1939_v10  ;;  %v1922_v18 = vrot.slane %v1921_v13, 1  ;;  %v1928_v51 = vmax.f32 %v1926_v9, %v1927_v14  ;;  %v1909_v20 = vmax.f32 %v1907_v35, %v1908_v57 }
 0x217   : > { %1895 = vst [vmem:[%s3336_s12] sm:$0x1] %v1894_v11  ;;  %v1935_v24 = vmax.f32 %v1933_v62, %v1934_v15  ;;  %v1946_v26 = vsel %vm995_vm0, %v1819_v44, -inf  ;;  %v1916_v29 = vmax.f32 %v1914_v6, %v1915_v16 }
 0x218   : > { %v1941_v25 = vrot.slane %v1940_v46, 2  ;;  %v1923_v30 = vmax.f32 %v1921_v13, %v1922_v18  ;;  %v1929_v32 = vrot.slane %v1928_v51, 1  ;;  %v1947_v12 = vmax.f32 %v1945_v19, %v1946_v26 }
 0x219   : > { %v1936_v39 = vrot.slane %v1935_v24, 1  ;;  %v1954_v47 = vmax.f32 %v1902_v48, %v1916_v29 }
 0x21a   : > { %v1942_v34 = vmax.f32 %v1940_v46, %v1941_v25  ;;  %v1930_v0 = vmax.f32 %v1928_v51, %v1929_v32  ;;  %v1948_v40 = vrot.slane %v1947_v12, 4  ;;  %v1955_v43 = vmax.f32 %v1909_v20, %v1923_v30 }
 0x21b   : > { %v1937_v22 = vmax.f32 %v1935_v24, %v1936_v39 }
 0x21c   : > { %v1943_v41 = vrot.slane %v1942_v34, 1  ;;  %v1949_v45 = vmax.f32 %v1947_v12, %v1948_v40  ;;  %v1957_v49 = vmax.f32 %v1916_v29, %v1930_v0  ;;  %v1956_v52 = vadd.f32 %v1955_v43, %v1954_v47 }
 0x21d   : > { %v1960_v27 = vmax.f32 %v1923_v30, %v1937_v22 }
 0x21e   : > { %v1944_v50 = vmax.f32 %v1942_v34, %v1943_v41  ;;  %v1950_v17 = vrot.slane %v1949_v45, 2 }
 0x220   : > { %v1951_v23 = vmax.f32 %v1949_v45, %v1950_v17  ;;  %v1958_v44 = vmax.f32 %v1957_v49, %v1944_v50 }
 0x222   : > { %v1952_v53 = vrot.slane %v1951_v23, 1  ;;  %v1959_v5 = vadd.f32 %v1958_v44, %v1956_v52 }
 0x224   : > { %v1953_v54 = vmax.f32 %v1951_v23, %v1952_v53 }
 0x226   : > { %v1961_v55 = vmax.f32 %v1960_v27, %v1953_v54 }
 0x228   : > { %v1962_v36 = vadd.f32 %v1961_v55, %v1959_v5 }
 0x22a   : > { %v1963_v42 = vmul.f32 0.25, %v1962_v36 }
 0x22c   : > { %1964 = vst [vmem:[%s3336_s12 + $0x1] sm:$0x1] %v1963_v42 }
 0x22d PF: > { %s3756_s5 = sld [smem:[#allocation24_spill]]  ;;  %s1980_s25 = sshll.u32 %s3336_s12, 4  ;;  %s1981_s25 = int_to_ptr.vmem [resolvable:$true] %s1980_s25 }
 0x22e   : > { %s3758_s16 = sld [smem:[#allocation34_spill]]  ;;  %s1966_s21 = scalar_lea.sflag [#allocation5], %s3322_s23 }
 0x233   : > { %s2578_s8 = sshll.u32 %s3756_s5, 1 }
 0x234   : > { %s3759_s4 = smov %s3758_s16  ;;  %s1978_s18 = scalar_lea.hbm %s3758_s16, %s2578_s8 }
 0x235   : > { %s1982_s6 = sshll.u32 %s1978_s18, 4  ;;  %s2929_s7 = scalar_lea.hbm %s3759_s4, 4  ;;  %s1983_s6 = int_to_ptr.hbm [resolvable:$true] %s1982_s6 }
 0x236   : > { %s2923_s13 = sshra.s32 %s1983_s6, 4  ;;  %s2924_s13 = int_to_ptr.hbm [resolvable:$true] %s2923_s13 }
 0x237   : > { %s2925_s0 = scalar_lea.hbm %s2924_s13, 2  ;;  %p2930_p6 = scmp.lt.s32.totalorder %s2924_s13, %s3759_s4 }
 0x238   : > { %p2926_p1 = scmp.ne.s32.totalorder %s2924_s13, %s2925_s0  ;;  %p2931_p9 = scmp.lt.s32.totalorder %s2929_s7, %s2925_s0 }
 0x23a   : > { %p2927_p4 = pnand %p2926_p1, %p3252_p11  ;;  %p2932_p10 = por %p2931_p9, %p2930_p6 }
 0x23c   : > { %p2928_p5 = pneg %p2927_p4 }
 0x23e   : > { %p2933_p2 = pnand %p2932_p10, %p2928_p5 }
 0x240   : > { %2936 = shalt.err (!%p2933_p2)
}
 0x241   : > { %2693 = dma.vmem_to_hbm [thread:$0]  (%p3252_p11), %s1981_s25, 32, %s1983_s6, %s1966_s21  }
 0x242 PF: > { %s3760_s23 = sld [smem:[#allocation20_spill]]  ;;  %p2699_p3 = scmp.ge.s32.totalorder %s3067_s28, 2 }
 0x244   : > { %p2696_p7 = pnand %p2699_p3, %p3256_p12 }
 0x246   : > { %p2697_p13 = pneg %p2696_p7 }
 0x248   : > { %s1994_s15 = sand.u32 1, %s3760_s23  }
 0x249   : > { %s1995_s5 = scalar_lea.sflag [#allocation5], %s1994_s15 }
 0x24a   : > { %3010 = dma.done.wait (%p2697_p13), %s1995_s5, 32  }
 0x24b   : > { %3012 = vsyncadd (%p2697_p13), %s1995_s5, 4294967264  ;;  %s26_s28 = sadd.s32 1, %s3067_s28   ;;  %s3763_s15 = sld [smem:[#allocation21_spill]] }
 0x24c   : > { %p3664_p8 = scmp.ge.s32.totalorder %s26_s28, 6   ;;  %s3764_s10 = sld [smem:[#allocation29_spill]] }
 0x24d   : > { %s3765_s14 = sld [smem:[#allocation28_spill]]  ;;  %s3770_s16 = smov %s3023_s17 }
 0x24e   : > { %s3766_s9 = sld [smem:[#allocation22_spill]]  ;;  %s3772_s18 = smov %s3031_s19 }
 0x24f   : > { %s3767_s23 = sld [smem:[#allocation27_spill]]  ;;  %s3773_s19 = smov %s3035_s20 }
 0x250   : > { %s3768_s6 = sld [smem:[#allocation25_spill]]  ;;  %s3775_s21 = smov %s3043_s22 }
 0x251   : > { %s3769_s13 = sld [smem:[#allocation26_spill]]  ;;  %s3777_s24 = smov %s3059_s26 }
 0x252   : > { %s3771_s17 = smov %s3764_s10  ;;  %s3778_s25 = smov %s3063_s27 }
 0x253   : > { %s3774_s20 = smov %s3765_s14  ;;  %25 = sbr.rel (!%p3664_p8) target bundleno = 17 (0x11), region = 139 }
 0x254   : > { %s3776_s22 = smov %s3766_s9 }
 0x256   : > { %s3779_s26 = smov %s3768_s6 }
 0x257   : > { %s3780_s27 = smov %s3769_s13 }
 0x258   :  { %2001 = vsyncpa [#allocation4], 1 }
 0x259   :  { %2003 = vsyncpa [#allocation4 + $0x1], 1 }
 0x25a   :  { %2004 = vsyncpa [#allocation7], 1 }
 0x25b   :  { %2006 = vsyncpa [#allocation7 + $0x1], 1 }
 0x25c   :  { %2007 = vsyncpa [#allocation10], 1 }
 0x25d   :  { %2009 = vsyncpa [#allocation10 + $0x1], 1 }
 0x25e   :  { %2010 = vsyncpa [#allocation5], 1 }
 0x25f   :  { %2012 = vsyncpa [#allocation5 + $0x1], 1 }

</bundles_post_ra>
